<compile_context>
chip_gen: v6e
topology: v6e:2x2x1
jax: 0.10.0
libtpu: 0.0.40
codegen_flags: <defaults>
</compile_context>

<pallas_src>
import functools

import jax
import jax.numpy as jnp
from jax.experimental import pallas as pl
from jax.experimental.pallas import tpu as pltpu


def _coordconvT_kernel(x_ref, r_ref, wall_ref, rowterm_ref, yyrow_ref, o_ref,
                       *, C, Cout, TB):
    """One (batch-tile, row-tile) grid step.

    x_ref:       (TB, C, TL, FW)   raw input rows, F image rows folded per lane row
    r_ref:       (FW, L)           constant 0/1 lane-expansion matrix (kh/kw duplication)
    wall_ref:    (C+1, Cout, L)    per-output-lane conv weights; channel C is the yy weight
    rowterm_ref: (Cout, L)         xx term + intra-fold yy term + bias (row-invariant)
    yyrow_ref:   (TL, 1)           yy value of the first image row of each lane row
    o_ref:       (TB, Cout, TL, L) output already pixel-shuffled: l = f*4W + kh*2W + 2w + kw
    """
    TL = o_ref.shape[2]
    L = o_ref.shape[3]
    R = r_ref[...]                                            # (FW, L)
    # yy broadcast hoisted once per step; it then acts as the (C+1)-th MAC channel.
    yy2 = jnp.broadcast_to(yyrow_ref[...], (TL, L))           # (TL, L)

    for tb in range(TB):
        # kw/kh lane expansion of the raw rows on the idle MXU.  R is 0/1, so with
        # HIGHEST precision the result is (near-)exact f32.
        xr = [jnp.dot(x_ref[tb, c, :, :], R,
                      preferred_element_type=jnp.float32,
                      precision=jax.lax.Precision.HIGHEST)
              for c in range(C)]                              # C x (TL, L)
        # Tiny channel count -> unrolled VPU broadcast-MACs (an MXU contraction of
        # depth C+1 would sit at a few % utilization).  The (1, L) weight operands
        # broadcast along sublanes at the multiply (replicated layout, no copies).
        for o in range(Cout):
            acc = yy2 * wall_ref[C, o:o + 1, :] + rowterm_ref[o:o + 1, :]
            for c in range(C):
                acc = acc + xr[c] * wall_ref[c, o:o + 1, :]
            o_ref[tb, o, :, :] = acc.astype(o_ref.dtype)


def _vmem_limits():
    """Generation-aware scoped-VMEM limit and per-step block budget."""
    cap = 64 << 20                      # conservative default = v7x physical VMEM / TC
    try:
        info = pltpu.get_tpu_info()
        cap = int(getattr(info, "vmem_capacity_bytes", cap))
    except Exception:
        pass
    limit = min(cap // 2, 64 << 20)     # 32 MiB on v7x, 64 MiB on v5e/v6e
    return limit, limit // 4            # per-step block budget (double-buffer headroom)


def _pick_fold(H, W):
    """Image rows folded per lane row so the output lane width F*4W is >=128 and
    ideally a multiple of 128 (unmasked stores).  F must divide H."""
    best = 1
    for f in range(1, min(H, 64) + 1):
        if H % f:
            continue
        lanes = 4 * W * f
        if lanes > 2048:
            break
        if lanes % 128 == 0:
            return f
        if lanes < 128:
            best = f
    return best


def _pick_row_tile(Hr, bytes_per_row, budget, want_multi):
    """Largest lane-row tile TL under `budget`; multiple of 8 (or full Hr).  When
    want_multi (B == 1), keep >=2 -- preferably an even number of -- tiles so both
    v7x TensorCores get balanced shards."""
    if Hr <= 8:
        return Hr
    divs = [t for t in range(8, Hr + 1, 8) if Hr % t == 0]
    if divs:
        fit = [t for t in divs if t * bytes_per_row <= budget] or divs[:1]
        if want_multi:
            multi = [t for t in fit if Hr // t >= 2]
            even = [t for t in multi if (Hr // t) % 2 == 0]
            fit = even or multi or fit
        return fit[-1]
    # Hr not a multiple of 8: use a multiple-of-8 tile and let the cdiv grid mask the
    # ragged last tile instead of blowing the VMEM budget with one full-height block.
    tl = (budget // max(bytes_per_row, 1)) // 8 * 8
    tl = max(8, min(tl, (Hr // 8) * 8, 1024))
    if want_multi:
        tl = min(tl, max(8, ((Hr + 15) // 16) * 8))
    return tl


def _pick_batch_tile(B, n_row_tiles, tile_bytes, budget):
    """Grow the batch tile while per-step blocks stay small (<~1 MiB) and the grid
    keeps >=2 steps for megacore sharding / pipelining."""
    tb = 1
    for cand in range(2, B + 1):
        if B % cand:
            continue
        if (B // cand) * n_row_tiles < 2:
            break
        if cand * tile_bytes > min(budget, 4 << 20):
            break
        tb = cand
        if tb * tile_bytes >= (1 << 20):
            break
    return tb


def coord_conv_transpose(x, weight, bias, out_dtype=jnp.float32):
    """AddCoords + ConvTranspose2d(kernel=2, stride=2, padding=0).

    x:      (B, C, H, W)      float32 NCHW (PyTorch convention)
    weight: (C+2, Cout, 2, 2) PyTorch ConvTranspose2d layout, in-channel order [x.., xx, yy]
    bias:   (Cout,)
    out_dtype: jnp.float32 (default) or jnp.bfloat16 (HBM-bound win, esp. on v5e)
    returns (B, Cout, 2H, 2W)
    """
    B, C, H, W = x.shape
    Cin, Cout, K, K2 = weight.shape
    assert Cin == C + 2 and K == 2 and K2 == 2
    # The torch AddCoords only concatenates cleanly when H == W and divides by
    # (size - 1); reject the degenerate 1x1 case explicitly.
    assert H == W, "AddCoords in the reference module requires square inputs"
    assert H > 1, "AddCoords divides by (size - 1); H == W == 1 is ill-defined"

    x = x.astype(jnp.float32)
    weight = weight.astype(jnp.float32)
    bias = bias.astype(jnp.float32)
    S = H

    # ---- fold F image rows per lane row so output rows are lane-dense --------------
    F = _pick_fold(H, W)
    Hr = H // F                         # lane rows per image
    FW = F * W                          # input lanes per lane row
    L = F * 4 * W                       # output lanes per lane row

    # ---- tiny per-lane constants, O(Cout * L) ---------------------------------------
    # Output lane layout: j = f*4W + kh*2W + 2w + kw  (f = image row within the fold)
    j = jnp.arange(L)
    f_j = j // (4 * W)
    r4 = j % (4 * W)
    kh_j = r4 // (2 * W)
    kw_j = r4 % 2
    w_j = (r4 % (2 * W)) // 2
    wlane = weight[:, :, kh_j, kw_j]                       # (C+2, Cout, L)
    # channels 0..C-1 = data channels, channel C = yy (its row-varying part)
    wall = jnp.concatenate([wlane[:C], wlane[C + 1:C + 2]], axis=0)   # (C+1, Cout, L)
    xx_lane = w_j.astype(jnp.float32) / (S - 1) * 2.0 - 1.0
    yyoff = f_j.astype(jnp.float32) * (2.0 / (S - 1))      # intra-fold part of yy
    rowterm = (wlane[C] * xx_lane[None, :]
               + wlane[C + 1] * yyoff[None, :]
               + bias[:, None])                            # (Cout, L)
    # 0/1 expansion matrix: source lane f*W + w feeds its 4 (kh, kw) output lanes.
    src = f_j * W + w_j                                    # (L,)
    R = (jnp.arange(FW)[:, None] == src[None, :]).astype(jnp.float32)   # (FW, L)
    # yy value of the first image row of each lane row (the rest is in rowterm).
    yyrow = ((jnp.arange(Hr, dtype=jnp.float32) * F) / (S - 1) * 2.0 - 1.0)[:, None]

    # Free reshape: fold F image rows into the lane axis of the (small) input.
    x2 = x.reshape(B, C, Hr, FW)

    # ---- tiling ----------------------------------------------------------------------
    osz = jnp.dtype(out_dtype).itemsize
    limit, budget = _vmem_limits()
    # per-lane-row bytes per batch element: input block + output block + expanded rows
    bytes_per_row = 4 * C * FW + osz * Cout * L + 4 * C * L
    TL = _pick_row_tile(Hr, bytes_per_row, budget, want_multi=(B == 1))
    n_row_tiles = pl.cdiv(Hr, TL)
    TB = _pick_batch_tile(B, n_row_tiles, TL * bytes_per_row, budget)
    grid = (B // TB, n_row_tiles)

    cost = pl.CostEstimate(
        flops=int(2 * B * Cout * H * 4 * W * (C + 1)       # VPU MACs
                  + 2 * B * C * Hr * FW * L),              # MXU lane expansion
        transcendentals=0,
        bytes_accessed=int(x2.size * 4 + B * Cout * Hr * L * osz
                           + (wall.size + rowterm.size + R.size + yyrow.size) * 4),
    )

    out = pl.pallas_call(
        functools.partial(_coordconvT_kernel, C=C, Cout=Cout, TB=TB),
        out_shape=jax.ShapeDtypeStruct((B, Cout, Hr, L), out_dtype),
        grid=grid,
        in_specs=[
            pl.BlockSpec((TB, C, TL, FW), lambda b, r: (b, 0, r, 0)),   # raw input rows
            pl.BlockSpec((FW, L), lambda b, r: (0, 0)),                 # expansion matrix
            pl.BlockSpec((C + 1, Cout, L), lambda b, r: (0, 0, 0)),     # lane weights
            pl.BlockSpec((Cout, L), lambda b, r: (0, 0)),               # xx/yy-off/bias row
            pl.BlockSpec((TL, 1), lambda b, r: (r, 0)),                 # yy per lane row
        ],
        out_specs=pl.BlockSpec((TB, Cout, TL, L), lambda b, r: (b, 0, r, 0)),
        compiler_params=pltpu.CompilerParams(
            dimension_semantics=("parallel", "parallel"),
            vmem_limit_bytes=limit,
        ),
        cost_estimate=cost,
    )(x2, R, wall, rowterm, yyrow)

    # (Hr, L) -> (2H, 2W) only splits/merges trailing dims: a free reshape, no transpose.
    return out.reshape(B, Cout, 2 * H, 2 * W)


def _reference(x, weight, bias):
    """Pure-jnp reference of AddCoords + ConvTranspose2d(k=2, s=2, p=0)."""
    B, C, H, W = x.shape
    Cin, Cout, K, _ = weight.shape
    ww = jnp.arange(W, dtype=jnp.float32)
    hh = jnp.arange(H, dtype=jnp.float32)
    xx = jnp.broadcast_to((ww / (H - 1)) * 2.0 - 1.0, (H, W))
    yy = jnp.broadcast_to(((hh / (W - 1)) * 2.0 - 1.0)[:, None], (H, W))
    addc = jnp.concatenate(
        [x,
         jnp.broadcast_to(xx, (B, 1, H, W)),
         jnp.broadcast_to(yy, (B, 1, H, W))], axis=1)
    out = jnp.einsum('bchw,cokl->bohkwl', addc, weight, precision='highest')
    out = out.reshape(B, Cout, H * K, W * K) + bias[None, :, None, None]
    return out


if __name__ == "__main__":
    key = jax.random.PRNGKey(0)
    kx, kw_, kb = jax.random.split(key, 3)

    B, C, H, W = 2, 4, 16, 16
    Cout, K = 8, 2                       # ConvTranspose2d(C+2, 8, kernel_size=2, stride=2)

    x = jax.random.normal(kx, (B, C, H, W), dtype=jnp.float32)
    weight = jax.random.normal(kw_, (C + 2, Cout, K, K), dtype=jnp.float32) * 0.1
    bias = jax.random.normal(kb, (Cout,), dtype=jnp.float32) * 0.1

    fn = jax.jit(coord_conv_transpose)
    out = jax.block_until_ready(fn(x, weight, bias))

    ref = _reference(x, weight, bias)
    assert out.shape == (B, Cout, H * K, W * K), out.shape
    err = float(jnp.max(jnp.abs(out - ref)))
    assert jnp.allclose(out, ref, atol=1e-4, rtol=1e-4), err

    print("KERNEL_OK")
</pallas_src>

<mosaic_0001>
module attributes {stable_mosaic.version = 11 : i64} {
  func.func @_coordconvT_kernel(%arg0: i32, %arg1: i32, %arg2: memref<1x4x8x32xf32, #tpu.memory_space<vmem>>, %arg3: memref<32x128xf32, #tpu.memory_space<vmem>>, %arg4: memref<5x8x128xf32, #tpu.memory_space<vmem>>, %arg5: memref<8x128xf32, #tpu.memory_space<vmem>>, %arg6: memref<8x1xf32, #tpu.memory_space<vmem>>, %arg7: memref<1x8x8x128xf32, #tpu.memory_space<vmem>>) attributes {dimension_semantics = [#tpu.dimension_semantics<parallel>, #tpu.dimension_semantics<parallel>], iteration_bounds = array<i64: 2, 1>, scalar_prefetch = 0 : i64, scratch_operands = 0 : i64, tpu.core_type = #tpu.core_type<tc>, window_params = [{transform_indices = @transform_0, window_bounds = array<i64: 1, 4, 8, 32>}, {pipeline_mode = #tpu.pipeline_mode<synchronous>, transform_indices = @transform_1, window_bounds = array<i64: 32, 128>}, {pipeline_mode = #tpu.pipeline_mode<synchronous>, transform_indices = @transform_2, window_bounds = array<i64: 5, 8, 128>}, {pipeline_mode = #tpu.pipeline_mode<synchronous>, transform_indices = @transform_3, window_bounds = array<i64: 8, 128>}, {transform_indices = @transform_4, window_bounds = array<i64: 8, 1>}, {transform_indices = @transform_5, window_bounds = array<i64: 1, 8, 8, 128>}]} {
    %c0 = arith.constant 0 : index
    %c0_0 = arith.constant 0 : index
    %0 = vector.load %arg3[%c0, %c0_0] : memref<32x128xf32, #tpu.memory_space<vmem>>, vector<32x128xf32>
    %c0_1 = arith.constant 0 : index
    %c0_2 = arith.constant 0 : index
    %1 = vector.load %arg6[%c0_1, %c0_2] : memref<8x1xf32, #tpu.memory_space<vmem>>, vector<8x1xf32>
    %2 = vector.shape_cast %1 : vector<8x1xf32> to vector<8x1xf32>
    %3 = vector.broadcast %2 : vector<8x1xf32> to vector<8x128xf32>
    %c0_3 = arith.constant 0 : index
    %c0_4 = arith.constant 0 : index
    %c0_5 = arith.constant 0 : index
    %c0_6 = arith.constant 0 : index
    %4 = vector.load %arg2[%c0_3, %c0_4, %c0_5, %c0_6] : memref<1x4x8x32xf32, #tpu.memory_space<vmem>>, vector<1x1x8x32xf32>
    %5 = vector.shape_cast %4 : vector<1x1x8x32xf32> to vector<8x32xf32>
    %cst = arith.constant dense<0.000000e+00> : vector<8x128xf32>
    %6 = tpu.matmul %5, %0, %cst {dimension_numbers = #tpu.dot_dimension_numbers<[1], [0], [0], [1], [0, 0, 1, 1], [], []>, precision = #tpu.contract_precision<fp32>} : vector<8x32xf32>, vector<32x128xf32>, vector<8x128xf32> -> vector<8x128xf32>
    %c0_7 = arith.constant 0 : index
    %c1 = arith.constant 1 : index
    %c0_8 = arith.constant 0 : index
    %c0_9 = arith.constant 0 : index
    %7 = vector.load %arg2[%c0_7, %c1, %c0_8, %c0_9] : memref<1x4x8x32xf32, #tpu.memory_space<vmem>>, vector<1x1x8x32xf32>
    %8 = vector.shape_cast %7 : vector<1x1x8x32xf32> to vector<8x32xf32>
    %cst_10 = arith.constant dense<0.000000e+00> : vector<8x128xf32>
    %9 = tpu.matmul %8, %0, %cst_10 {dimension_numbers = #tpu.dot_dimension_numbers<[1], [0], [0], [1], [0, 0, 1, 1], [], []>, precision = #tpu.contract_precision<fp32>} : vector<8x32xf32>, vector<32x128xf32>, vector<8x128xf32> -> vector<8x128xf32>
    %c0_11 = arith.constant 0 : index
    %c2 = arith.constant 2 : index
    %c0_12 = arith.constant 0 : index
    %c0_13 = arith.constant 0 : index
    %10 = vector.load %arg2[%c0_11, %c2, %c0_12, %c0_13] : memref<1x4x8x32xf32, #tpu.memory_space<vmem>>, vector<1x1x8x32xf32>
    %11 = vector.shape_cast %10 : vector<1x1x8x32xf32> to vector<8x32xf32>
    %cst_14 = arith.constant dense<0.000000e+00> : vector<8x128xf32>
    %12 = tpu.matmul %11, %0, %cst_14 {dimension_numbers = #tpu.dot_dimension_numbers<[1], [0], [0], [1], [0, 0, 1, 1], [], []>, precision = #tpu.contract_precision<fp32>} : vector<8x32xf32>, vector<32x128xf32>, vector<8x128xf32> -> vector<8x128xf32>
    %c0_15 = arith.constant 0 : index
    %c3 = arith.constant 3 : index
    %c0_16 = arith.constant 0 : index
    %c0_17 = arith.constant 0 : index
    %13 = vector.load %arg2[%c0_15, %c3, %c0_16, %c0_17] : memref<1x4x8x32xf32, #tpu.memory_space<vmem>>, vector<1x1x8x32xf32>
    %14 = vector.shape_cast %13 : vector<1x1x8x32xf32> to vector<8x32xf32>
    %cst_18 = arith.constant dense<0.000000e+00> : vector<8x128xf32>
    %15 = tpu.matmul %14, %0, %cst_18 {dimension_numbers = #tpu.dot_dimension_numbers<[1], [0], [0], [1], [0, 0, 1, 1], [], []>, precision = #tpu.contract_precision<fp32>} : vector<8x32xf32>, vector<32x128xf32>, vector<8x128xf32> -> vector<8x128xf32>
    %c4 = arith.constant 4 : index
    %c0_19 = arith.constant 0 : index
    %c0_20 = arith.constant 0 : index
    %16 = vector.load %arg4[%c4, %c0_19, %c0_20] : memref<5x8x128xf32, #tpu.memory_space<vmem>>, vector<1x1x128xf32>
    %17 = vector.shape_cast %16 : vector<1x1x128xf32> to vector<1x128xf32>
    %18 = vector.broadcast %17 : vector<1x128xf32> to vector<8x128xf32>
    %19 = arith.mulf %3, %18 : vector<8x128xf32>
    %c0_21 = arith.constant 0 : index
    %c0_22 = arith.constant 0 : index
    %20 = vector.load %arg5[%c0_21, %c0_22] : memref<8x128xf32, #tpu.memory_space<vmem>>, vector<1x128xf32>
    %21 = vector.broadcast %20 : vector<1x128xf32> to vector<8x128xf32>
    %22 = arith.addf %19, %21 : vector<8x128xf32>
    %c0_23 = arith.constant 0 : index
    %c0_24 = arith.constant 0 : index
    %c0_25 = arith.constant 0 : index
    %23 = vector.load %arg4[%c0_23, %c0_24, %c0_25] : memref<5x8x128xf32, #tpu.memory_space<vmem>>, vector<1x1x128xf32>
    %24 = vector.shape_cast %23 : vector<1x1x128xf32> to vector<1x128xf32>
    %25 = vector.broadcast %24 : vector<1x128xf32> to vector<8x128xf32>
    %26 = arith.mulf %6, %25 : vector<8x128xf32>
    %27 = arith.addf %22, %26 : vector<8x128xf32>
    %c1_26 = arith.constant 1 : index
    %c0_27 = arith.constant 0 : index
    %c0_28 = arith.constant 0 : index
    %28 = vector.load %arg4[%c1_26, %c0_27, %c0_28] : memref<5x8x128xf32, #tpu.memory_space<vmem>>, vector<1x1x128xf32>
    %29 = vector.shape_cast %28 : vector<1x1x128xf32> to vector<1x128xf32>
    %30 = vector.broadcast %29 : vector<1x128xf32> to vector<8x128xf32>
    %31 = arith.mulf %9, %30 : vector<8x128xf32>
    %32 = arith.addf %27, %31 : vector<8x128xf32>
    %c2_29 = arith.constant 2 : index
    %c0_30 = arith.constant 0 : index
    %c0_31 = arith.constant 0 : index
    %33 = vector.load %arg4[%c2_29, %c0_30, %c0_31] : memref<5x8x128xf32, #tpu.memory_space<vmem>>, vector<1x1x128xf32>
    %34 = vector.shape_cast %33 : vector<1x1x128xf32> to vector<1x128xf32>
    %35 = vector.broadcast %34 : vector<1x128xf32> to vector<8x128xf32>
    %36 = arith.mulf %12, %35 : vector<8x128xf32>
    %37 = arith.addf %32, %36 : vector<8x128xf32>
    %c3_32 = arith.constant 3 : index
    %c0_33 = arith.constant 0 : index
    %c0_34 = arith.constant 0 : index
    %38 = vector.load %arg4[%c3_32, %c0_33, %c0_34] : memref<5x8x128xf32, #tpu.memory_space<vmem>>, vector<1x1x128xf32>
    %39 = vector.shape_cast %38 : vector<1x1x128xf32> to vector<1x128xf32>
    %40 = vector.broadcast %39 : vector<1x128xf32> to vector<8x128xf32>
    %41 = arith.mulf %15, %40 : vector<8x128xf32>
    %42 = arith.addf %37, %41 : vector<8x128xf32>
    %c0_35 = arith.constant 0 : index
    %c0_36 = arith.constant 0 : index
    %c0_37 = arith.constant 0 : index
    %c0_38 = arith.constant 0 : index
    %43 = vector.load %arg7[%c0_35, %c0_36, %c0_37, %c0_38] : memref<1x8x8x128xf32, #tpu.memory_space<vmem>>, vector<1x1x8x128xf32>
    %44 = vector.shape_cast %43 : vector<1x1x8x128xf32> to vector<8x128xf32>
    %45 = vector.shape_cast %42 : vector<8x128xf32> to vector<1x1x8x128xf32>
    tpu.vector_store %arg7[%c0_35, %c0_36, %c0_37, %c0_38], %45 {strides = array<i32>} : memref<1x8x8x128xf32, #tpu.memory_space<vmem>>, vector<1x1x8x128xf32>,
    %c4_39 = arith.constant 4 : index
    %c1_40 = arith.constant 1 : index
    %c0_41 = arith.constant 0 : index
    %46 = vector.load %arg4[%c4_39, %c1_40, %c0_41] : memref<5x8x128xf32, #tpu.memory_space<vmem>>, vector<1x1x128xf32>
    %47 = vector.shape_cast %46 : vector<1x1x128xf32> to vector<1x128xf32>
    %48 = vector.broadcast %47 : vector<1x128xf32> to vector<8x128xf32>
    %49 = arith.mulf %3, %48 : vector<8x128xf32>
    %c1_42 = arith.constant 1 : index
    %c0_43 = arith.constant 0 : index
    %50 = vector.load %arg5[%c1_42, %c0_43] : memref<8x128xf32, #tpu.memory_space<vmem>>, vector<1x128xf32>
    %51 = vector.broadcast %50 : vector<1x128xf32> to vector<8x128xf32>
    %52 = arith.addf %49, %51 : vector<8x128xf32>
    %c0_44 = arith.constant 0 : index
    %c1_45 = arith.constant 1 : index
    %c0_46 = arith.constant 0 : index
    %53 = vector.load %arg4[%c0_44, %c1_45, %c0_46] : memref<5x8x128xf32, #tpu.memory_space<vmem>>, vector<1x1x128xf32>
    %54 = vector.shape_cast %53 : vector<1x1x128xf32> to vector<1x128xf32>
    %55 = vector.broadcast %54 : vector<1x128xf32> to vector<8x128xf32>
    %56 = arith.mulf %6, %55 : vector<8x128xf32>
    %57 = arith.addf %52, %56 : vector<8x128xf32>
    %c1_47 = arith.constant 1 : index
    %c1_48 = arith.constant 1 : index
    %c0_49 = arith.constant 0 : index
    %58 = vector.load %arg4[%c1_47, %c1_48, %c0_49] : memref<5x8x128xf32, #tpu.memory_space<vmem>>, vector<1x1x128xf32>
    %59 = vector.shape_cast %58 : vector<1x1x128xf32> to vector<1x128xf32>
    %60 = vector.broadcast %59 : vector<1x128xf32> to vector<8x128xf32>
    %61 = arith.mulf %9, %60 : vector<8x128xf32>
    %62 = arith.addf %57, %61 : vector<8x128xf32>
    %c2_50 = arith.constant 2 : index
    %c1_51 = arith.constant 1 : index
    %c0_52 = arith.constant 0 : index
    %63 = vector.load %arg4[%c2_50, %c1_51, %c0_52] : memref<5x8x128xf32, #tpu.memory_space<vmem>>, vector<1x1x128xf32>
    %64 = vector.shape_cast %63 : vector<1x1x128xf32> to vector<1x128xf32>
    %65 = vector.broadcast %64 : vector<1x128xf32> to vector<8x128xf32>
    %66 = arith.mulf %12, %65 : vector<8x128xf32>
    %67 = arith.addf %62, %66 : vector<8x128xf32>
    %c3_53 = arith.constant 3 : index
    %c1_54 = arith.constant 1 : index
    %c0_55 = arith.constant 0 : index
    %68 = vector.load %arg4[%c3_53, %c1_54, %c0_55] : memref<5x8x128xf32, #tpu.memory_space<vmem>>, vector<1x1x128xf32>
    %69 = vector.shape_cast %68 : vector<1x1x128xf32> to vector<1x128xf32>
    %70 = vector.broadcast %69 : vector<1x128xf32> to vector<8x128xf32>
    %71 = arith.mulf %15, %70 : vector<8x128xf32>
    %72 = arith.addf %67, %71 : vector<8x128xf32>
    %c0_56 = arith.constant 0 : index
    %c1_57 = arith.constant 1 : index
    %c0_58 = arith.constant 0 : index
    %c0_59 = arith.constant 0 : index
    %73 = vector.load %arg7[%c0_56, %c1_57, %c0_58, %c0_59] : memref<1x8x8x128xf32, #tpu.memory_space<vmem>>, vector<1x1x8x128xf32>
    %74 = vector.shape_cast %73 : vector<1x1x8x128xf32> to vector<8x128xf32>
    %75 = vector.shape_cast %72 : vector<8x128xf32> to vector<1x1x8x128xf32>
    tpu.vector_store %arg7[%c0_56, %c1_57, %c0_58, %c0_59], %75 {strides = array<i32>} : memref<1x8x8x128xf32, #tpu.memory_space<vmem>>, vector<1x1x8x128xf32>,
    %c4_60 = arith.constant 4 : index
    %c2_61 = arith.constant 2 : index
    %c0_62 = arith.constant 0 : index
    %76 = vector.load %arg4[%c4_60, %c2_61, %c0_62] : memref<5x8x128xf32, #tpu.memory_space<vmem>>, vector<1x1x128xf32>
    %77 = vector.shape_cast %76 : vector<1x1x128xf32> to vector<1x128xf32>
    %78 = vector.broadcast %77 : vector<1x128xf32> to vector<8x128xf32>
    %79 = arith.mulf %3, %78 : vector<8x128xf32>
    %c2_63 = arith.constant 2 : index
    %c0_64 = arith.constant 0 : index
    %80 = vector.load %arg5[%c2_63, %c0_64] : memref<8x128xf32, #tpu.memory_space<vmem>>, vector<1x128xf32>
    %81 = vector.broadcast %80 : vector<1x128xf32> to vector<8x128xf32>
    %82 = arith.addf %79, %81 : vector<8x128xf32>
    %c0_65 = arith.constant 0 : index
    %c2_66 = arith.constant 2 : index
    %c0_67 = arith.constant 0 : index
    %83 = vector.load %arg4[%c0_65, %c2_66, %c0_67] : memref<5x8x128xf32, #tpu.memory_space<vmem>>, vector<1x1x128xf32>
    %84 = vector.shape_cast %83 : vector<1x1x128xf32> to vector<1x128xf32>
    %85 = vector.broadcast %84 : vector<1x128xf32> to vector<8x128xf32>
    %86 = arith.mulf %6, %85 : vector<8x128xf32>
    %87 = arith.addf %82, %86 : vector<8x128xf32>
    %c1_68 = arith.constant 1 : index
    %c2_69 = arith.constant 2 : index
    %c0_70 = arith.constant 0 : index
    %88 = vector.load %arg4[%c1_68, %c2_69, %c0_70] : memref<5x8x128xf32, #tpu.memory_space<vmem>>, vector<1x1x128xf32>
    %89 = vector.shape_cast %88 : vector<1x1x128xf32> to vector<1x128xf32>
    %90 = vector.broadcast %89 : vector<1x128xf32> to vector<8x128xf32>
    %91 = arith.mulf %9, %90 : vector<8x128xf32>
    %92 = arith.addf %87, %91 : vector<8x128xf32>
    %c2_71 = arith.constant 2 : index
    %c2_72 = arith.constant 2 : index
    %c0_73 = arith.constant 0 : index
    %93 = vector.load %arg4[%c2_71, %c2_72, %c0_73] : memref<5x8x128xf32, #tpu.memory_space<vmem>>, vector<1x1x128xf32>
    %94 = vector.shape_cast %93 : vector<1x1x128xf32> to vector<1x128xf32>
    %95 = vector.broadcast %94 : vector<1x128xf32> to vector<8x128xf32>
    %96 = arith.mulf %12, %95 : vector<8x128xf32>
    %97 = arith.addf %92, %96 : vector<8x128xf32>
    %c3_74 = arith.constant 3 : index
    %c2_75 = arith.constant 2 : index
    %c0_76 = arith.constant 0 : index
    %98 = vector.load %arg4[%c3_74, %c2_75, %c0_76] : memref<5x8x128xf32, #tpu.memory_space<vmem>>, vector<1x1x128xf32>
    %99 = vector.shape_cast %98 : vector<1x1x128xf32> to vector<1x128xf32>
    %100 = vector.broadcast %99 : vector<1x128xf32> to vector<8x128xf32>
    %101 = arith.mulf %15, %100 : vector<8x128xf32>
    %102 = arith.addf %97, %101 : vector<8x128xf32>
    %c0_77 = arith.constant 0 : index
    %c2_78 = arith.constant 2 : index
    %c0_79 = arith.constant 0 : index
    %c0_80 = arith.constant 0 : index
    %103 = vector.load %arg7[%c0_77, %c2_78, %c0_79, %c0_80] : memref<1x8x8x128xf32, #tpu.memory_space<vmem>>, vector<1x1x8x128xf32>
    %104 = vector.shape_cast %103 : vector<1x1x8x128xf32> to vector<8x128xf32>
    %105 = vector.shape_cast %102 : vector<8x128xf32> to vector<1x1x8x128xf32>
    tpu.vector_store %arg7[%c0_77, %c2_78, %c0_79, %c0_80], %105 {strides = array<i32>} : memref<1x8x8x128xf32, #tpu.memory_space<vmem>>, vector<1x1x8x128xf32>,
    %c4_81 = arith.constant 4 : index
    %c3_82 = arith.constant 3 : index
    %c0_83 = arith.constant 0 : index
    %106 = vector.load %arg4[%c4_81, %c3_82, %c0_83] : memref<5x8x128xf32, #tpu.memory_space<vmem>>, vector<1x1x128xf32>
    %107 = vector.shape_cast %106 : vector<1x1x128xf32> to vector<1x128xf32>
    %108 = vector.broadcast %107 : vector<1x128xf32> to vector<8x128xf32>
    %109 = arith.mulf %3, %108 : vector<8x128xf32>
    %c3_84 = arith.constant 3 : index
    %c0_85 = arith.constant 0 : index
    %110 = vector.load %arg5[%c3_84, %c0_85] : memref<8x128xf32, #tpu.memory_space<vmem>>, vector<1x128xf32>
    %111 = vector.broadcast %110 : vector<1x128xf32> to vector<8x128xf32>
    %112 = arith.addf %109, %111 : vector<8x128xf32>
    %c0_86 = arith.constant 0 : index
    %c3_87 = arith.constant 3 : index
    %c0_88 = arith.constant 0 : index
    %113 = vector.load %arg4[%c0_86, %c3_87, %c0_88] : memref<5x8x128xf32, #tpu.memory_space<vmem>>, vector<1x1x128xf32>
    %114 = vector.shape_cast %113 : vector<1x1x128xf32> to vector<1x128xf32>
    %115 = vector.broadcast %114 : vector<1x128xf32> to vector<8x128xf32>
    %116 = arith.mulf %6, %115 : vector<8x128xf32>
    %117 = arith.addf %112, %116 : vector<8x128xf32>
    %c1_89 = arith.constant 1 : index
    %c3_90 = arith.constant 3 : index
    %c0_91 = arith.constant 0 : index
    %118 = vector.load %arg4[%c1_89, %c3_90, %c0_91] : memref<5x8x128xf32, #tpu.memory_space<vmem>>, vector<1x1x128xf32>
    %119 = vector.shape_cast %118 : vector<1x1x128xf32> to vector<1x128xf32>
    %120 = vector.broadcast %119 : vector<1x128xf32> to vector<8x128xf32>
    %121 = arith.mulf %9, %120 : vector<8x128xf32>
    %122 = arith.addf %117, %121 : vector<8x128xf32>
    %c2_92 = arith.constant 2 : index
    %c3_93 = arith.constant 3 : index
    %c0_94 = arith.constant 0 : index
    %123 = vector.load %arg4[%c2_92, %c3_93, %c0_94] : memref<5x8x128xf32, #tpu.memory_space<vmem>>, vector<1x1x128xf32>
    %124 = vector.shape_cast %123 : vector<1x1x128xf32> to vector<1x128xf32>
    %125 = vector.broadcast %124 : vector<1x128xf32> to vector<8x128xf32>
    %126 = arith.mulf %12, %125 : vector<8x128xf32>
    %127 = arith.addf %122, %126 : vector<8x128xf32>
    %c3_95 = arith.constant 3 : index
    %c3_96 = arith.constant 3 : index
    %c0_97 = arith.constant 0 : index
    %128 = vector.load %arg4[%c3_95, %c3_96, %c0_97] : memref<5x8x128xf32, #tpu.memory_space<vmem>>, vector<1x1x128xf32>
    %129 = vector.shape_cast %128 : vector<1x1x128xf32> to vector<1x128xf32>
    %130 = vector.broadcast %129 : vector<1x128xf32> to vector<8x128xf32>
    %131 = arith.mulf %15, %130 : vector<8x128xf32>
    %132 = arith.addf %127, %131 : vector<8x128xf32>
    %c0_98 = arith.constant 0 : index
    %c3_99 = arith.constant 3 : index
    %c0_100 = arith.constant 0 : index
    %c0_101 = arith.constant 0 : index
    %133 = vector.load %arg7[%c0_98, %c3_99, %c0_100, %c0_101] : memref<1x8x8x128xf32, #tpu.memory_space<vmem>>, vector<1x1x8x128xf32>
    %134 = vector.shape_cast %133 : vector<1x1x8x128xf32> to vector<8x128xf32>
    %135 = vector.shape_cast %132 : vector<8x128xf32> to vector<1x1x8x128xf32>
    tpu.vector_store %arg7[%c0_98, %c3_99, %c0_100, %c0_101], %135 {strides = array<i32>} : memref<1x8x8x128xf32, #tpu.memory_space<vmem>>, vector<1x1x8x128xf32>,
    %c4_102 = arith.constant 4 : index
    %c4_103 = arith.constant 4 : index
    %c0_104 = arith.constant 0 : index
    %136 = vector.load %arg4[%c4_102, %c4_103, %c0_104] : memref<5x8x128xf32, #tpu.memory_space<vmem>>, vector<1x1x128xf32>
    %137 = vector.shape_cast %136 : vector<1x1x128xf32> to vector<1x128xf32>
    %138 = vector.broadcast %137 : vector<1x128xf32> to vector<8x128xf32>
    %139 = arith.mulf %3, %138 : vector<8x128xf32>
    %c4_105 = arith.constant 4 : index
    %c0_106 = arith.constant 0 : index
    %140 = vector.load %arg5[%c4_105, %c0_106] : memref<8x128xf32, #tpu.memory_space<vmem>>, vector<1x128xf32>
    %141 = vector.broadcast %140 : vector<1x128xf32> to vector<8x128xf32>
    %142 = arith.addf %139, %141 : vector<8x128xf32>
    %c0_107 = arith.constant 0 : index
    %c4_108 = arith.constant 4 : index
    %c0_109 = arith.constant 0 : index
    %143 = vector.load %arg4[%c0_107, %c4_108, %c0_109] : memref<5x8x128xf32, #tpu.memory_space<vmem>>, vector<1x1x128xf32>
    %144 = vector.shape_cast %143 : vector<1x1x128xf32> to vector<1x128xf32>
    %145 = vector.broadcast %144 : vector<1x128xf32> to vector<8x128xf32>
    %146 = arith.mulf %6, %145 : vector<8x128xf32>
    %147 = arith.addf %142, %146 : vector<8x128xf32>
    %c1_110 = arith.constant 1 : index
    %c4_111 = arith.constant 4 : index
    %c0_112 = arith.constant 0 : index
    %148 = vector.load %arg4[%c1_110, %c4_111, %c0_112] : memref<5x8x128xf32, #tpu.memory_space<vmem>>, vector<1x1x128xf32>
    %149 = vector.shape_cast %148 : vector<1x1x128xf32> to vector<1x128xf32>
    %150 = vector.broadcast %149 : vector<1x128xf32> to vector<8x128xf32>
    %151 = arith.mulf %9, %150 : vector<8x128xf32>
    %152 = arith.addf %147, %151 : vector<8x128xf32>
    %c2_113 = arith.constant 2 : index
    %c4_114 = arith.constant 4 : index
    %c0_115 = arith.constant 0 : index
    %153 = vector.load %arg4[%c2_113, %c4_114, %c0_115] : memref<5x8x128xf32, #tpu.memory_space<vmem>>, vector<1x1x128xf32>
    %154 = vector.shape_cast %153 : vector<1x1x128xf32> to vector<1x128xf32>
    %155 = vector.broadcast %154 : vector<1x128xf32> to vector<8x128xf32>
    %156 = arith.mulf %12, %155 : vector<8x128xf32>
    %157 = arith.addf %152, %156 : vector<8x128xf32>
    %c3_116 = arith.constant 3 : index
    %c4_117 = arith.constant 4 : index
    %c0_118 = arith.constant 0 : index
    %158 = vector.load %arg4[%c3_116, %c4_117, %c0_118] : memref<5x8x128xf32, #tpu.memory_space<vmem>>, vector<1x1x128xf32>
    %159 = vector.shape_cast %158 : vector<1x1x128xf32> to vector<1x128xf32>
    %160 = vector.broadcast %159 : vector<1x128xf32> to vector<8x128xf32>
    %161 = arith.mulf %15, %160 : vector<8x128xf32>
    %162 = arith.addf %157, %161 : vector<8x128xf32>
    %c0_119 = arith.constant 0 : index
    %c4_120 = arith.constant 4 : index
    %c0_121 = arith.constant 0 : index
    %c0_122 = arith.constant 0 : index
    %163 = vector.load %arg7[%c0_119, %c4_120, %c0_121, %c0_122] : memref<1x8x8x128xf32, #tpu.memory_space<vmem>>, vector<1x1x8x128xf32>
    %164 = vector.shape_cast %163 : vector<1x1x8x128xf32> to vector<8x128xf32>
    %165 = vector.shape_cast %162 : vector<8x128xf32> to vector<1x1x8x128xf32>
    tpu.vector_store %arg7[%c0_119, %c4_120, %c0_121, %c0_122], %165 {strides = array<i32>} : memref<1x8x8x128xf32, #tpu.memory_space<vmem>>, vector<1x1x8x128xf32>,
    %c4_123 = arith.constant 4 : index
    %c5 = arith.constant 5 : index
    %c0_124 = arith.constant 0 : index
    %166 = vector.load %arg4[%c4_123, %c5, %c0_124] : memref<5x8x128xf32, #tpu.memory_space<vmem>>, vector<1x1x128xf32>
    %167 = vector.shape_cast %166 : vector<1x1x128xf32> to vector<1x128xf32>
    %168 = vector.broadcast %167 : vector<1x128xf32> to vector<8x128xf32>
    %169 = arith.mulf %3, %168 : vector<8x128xf32>
    %c5_125 = arith.constant 5 : index
    %c0_126 = arith.constant 0 : index
    %170 = vector.load %arg5[%c5_125, %c0_126] : memref<8x128xf32, #tpu.memory_space<vmem>>, vector<1x128xf32>
    %171 = vector.broadcast %170 : vector<1x128xf32> to vector<8x128xf32>
    %172 = arith.addf %169, %171 : vector<8x128xf32>
    %c0_127 = arith.constant 0 : index
    %c5_128 = arith.constant 5 : index
    %c0_129 = arith.constant 0 : index
    %173 = vector.load %arg4[%c0_127, %c5_128, %c0_129] : memref<5x8x128xf32, #tpu.memory_space<vmem>>, vector<1x1x128xf32>
    %174 = vector.shape_cast %173 : vector<1x1x128xf32> to vector<1x128xf32>
    %175 = vector.broadcast %174 : vector<1x128xf32> to vector<8x128xf32>
    %176 = arith.mulf %6, %175 : vector<8x128xf32>
    %177 = arith.addf %172, %176 : vector<8x128xf32>
    %c1_130 = arith.constant 1 : index
    %c5_131 = arith.constant 5 : index
    %c0_132 = arith.constant 0 : index
    %178 = vector.load %arg4[%c1_130, %c5_131, %c0_132] : memref<5x8x128xf32, #tpu.memory_space<vmem>>, vector<1x1x128xf32>
    %179 = vector.shape_cast %178 : vector<1x1x128xf32> to vector<1x128xf32>
    %180 = vector.broadcast %179 : vector<1x128xf32> to vector<8x128xf32>
    %181 = arith.mulf %9, %180 : vector<8x128xf32>
    %182 = arith.addf %177, %181 : vector<8x128xf32>
    %c2_133 = arith.constant 2 : index
    %c5_134 = arith.constant 5 : index
    %c0_135 = arith.constant 0 : index
    %183 = vector.load %arg4[%c2_133, %c5_134, %c0_135] : memref<5x8x128xf32, #tpu.memory_space<vmem>>, vector<1x1x128xf32>
    %184 = vector.shape_cast %183 : vector<1x1x128xf32> to vector<1x128xf32>
    %185 = vector.broadcast %184 : vector<1x128xf32> to vector<8x128xf32>
    %186 = arith.mulf %12, %185 : vector<8x128xf32>
    %187 = arith.addf %182, %186 : vector<8x128xf32>
    %c3_136 = arith.constant 3 : index
    %c5_137 = arith.constant 5 : index
    %c0_138 = arith.constant 0 : index
    %188 = vector.load %arg4[%c3_136, %c5_137, %c0_138] : memref<5x8x128xf32, #tpu.memory_space<vmem>>, vector<1x1x128xf32>
    %189 = vector.shape_cast %188 : vector<1x1x128xf32> to vector<1x128xf32>
    %190 = vector.broadcast %189 : vector<1x128xf32> to vector<8x128xf32>
    %191 = arith.mulf %15, %190 : vector<8x128xf32>
    %192 = arith.addf %187, %191 : vector<8x128xf32>
    %c0_139 = arith.constant 0 : index
    %c5_140 = arith.constant 5 : index
    %c0_141 = arith.constant 0 : index
    %c0_142 = arith.constant 0 : index
    %193 = vector.load %arg7[%c0_139, %c5_140, %c0_141, %c0_142] : memref<1x8x8x128xf32, #tpu.memory_space<vmem>>, vector<1x1x8x128xf32>
    %194 = vector.shape_cast %193 : vector<1x1x8x128xf32> to vector<8x128xf32>
    %195 = vector.shape_cast %192 : vector<8x128xf32> to vector<1x1x8x128xf32>
    tpu.vector_store %arg7[%c0_139, %c5_140, %c0_141, %c0_142], %195 {strides = array<i32>} : memref<1x8x8x128xf32, #tpu.memory_space<vmem>>, vector<1x1x8x128xf32>,
    %c4_143 = arith.constant 4 : index
    %c6 = arith.constant 6 : index
    %c0_144 = arith.constant 0 : index
    %196 = vector.load %arg4[%c4_143, %c6, %c0_144] : memref<5x8x128xf32, #tpu.memory_space<vmem>>, vector<1x1x128xf32>
    %197 = vector.shape_cast %196 : vector<1x1x128xf32> to vector<1x128xf32>
    %198 = vector.broadcast %197 : vector<1x128xf32> to vector<8x128xf32>
    %199 = arith.mulf %3, %198 : vector<8x128xf32>
    %c6_145 = arith.constant 6 : index
    %c0_146 = arith.constant 0 : index
    %200 = vector.load %arg5[%c6_145, %c0_146] : memref<8x128xf32, #tpu.memory_space<vmem>>, vector<1x128xf32>
    %201 = vector.broadcast %200 : vector<1x128xf32> to vector<8x128xf32>
    %202 = arith.addf %199, %201 : vector<8x128xf32>
    %c0_147 = arith.constant 0 : index
    %c6_148 = arith.constant 6 : index
    %c0_149 = arith.constant 0 : index
    %203 = vector.load %arg4[%c0_147, %c6_148, %c0_149] : memref<5x8x128xf32, #tpu.memory_space<vmem>>, vector<1x1x128xf32>
    %204 = vector.shape_cast %203 : vector<1x1x128xf32> to vector<1x128xf32>
    %205 = vector.broadcast %204 : vector<1x128xf32> to vector<8x128xf32>
    %206 = arith.mulf %6, %205 : vector<8x128xf32>
    %207 = arith.addf %202, %206 : vector<8x128xf32>
    %c1_150 = arith.constant 1 : index
    %c6_151 = arith.constant 6 : index
    %c0_152 = arith.constant 0 : index
    %208 = vector.load %arg4[%c1_150, %c6_151, %c0_152] : memref<5x8x128xf32, #tpu.memory_space<vmem>>, vector<1x1x128xf32>
    %209 = vector.shape_cast %208 : vector<1x1x128xf32> to vector<1x128xf32>
    %210 = vector.broadcast %209 : vector<1x128xf32> to vector<8x128xf32>
    %211 = arith.mulf %9, %210 : vector<8x128xf32>
    %212 = arith.addf %207, %211 : vector<8x128xf32>
    %c2_153 = arith.constant 2 : index
    %c6_154 = arith.constant 6 : index
    %c0_155 = arith.constant 0 : index
    %213 = vector.load %arg4[%c2_153, %c6_154, %c0_155] : memref<5x8x128xf32, #tpu.memory_space<vmem>>, vector<1x1x128xf32>
    %214 = vector.shape_cast %213 : vector<1x1x128xf32> to vector<1x128xf32>
    %215 = vector.broadcast %214 : vector<1x128xf32> to vector<8x128xf32>
    %216 = arith.mulf %12, %215 : vector<8x128xf32>
    %217 = arith.addf %212, %216 : vector<8x128xf32>
    %c3_156 = arith.constant 3 : index
    %c6_157 = arith.constant 6 : index
    %c0_158 = arith.constant 0 : index
    %218 = vector.load %arg4[%c3_156, %c6_157, %c0_158] : memref<5x8x128xf32, #tpu.memory_space<vmem>>, vector<1x1x128xf32>
    %219 = vector.shape_cast %218 : vector<1x1x128xf32> to vector<1x128xf32>
    %220 = vector.broadcast %219 : vector<1x128xf32> to vector<8x128xf32>
    %221 = arith.mulf %15, %220 : vector<8x128xf32>
    %222 = arith.addf %217, %221 : vector<8x128xf32>
    %c0_159 = arith.constant 0 : index
    %c6_160 = arith.constant 6 : index
    %c0_161 = arith.constant 0 : index
    %c0_162 = arith.constant 0 : index
    %223 = vector.load %arg7[%c0_159, %c6_160, %c0_161, %c0_162] : memref<1x8x8x128xf32, #tpu.memory_space<vmem>>, vector<1x1x8x128xf32>
    %224 = vector.shape_cast %223 : vector<1x1x8x128xf32> to vector<8x128xf32>
    %225 = vector.shape_cast %222 : vector<8x128xf32> to vector<1x1x8x128xf32>
    tpu.vector_store %arg7[%c0_159, %c6_160, %c0_161, %c0_162], %225 {strides = array<i32>} : memref<1x8x8x128xf32, #tpu.memory_space<vmem>>, vector<1x1x8x128xf32>,
    %c4_163 = arith.constant 4 : index
    %c7 = arith.constant 7 : index
    %c0_164 = arith.constant 0 : index
    %226 = vector.load %arg4[%c4_163, %c7, %c0_164] : memref<5x8x128xf32, #tpu.memory_space<vmem>>, vector<1x1x128xf32>
    %227 = vector.shape_cast %226 : vector<1x1x128xf32> to vector<1x128xf32>
    %228 = vector.broadcast %227 : vector<1x128xf32> to vector<8x128xf32>
    %229 = arith.mulf %3, %228 : vector<8x128xf32>
    %c7_165 = arith.constant 7 : index
    %c0_166 = arith.constant 0 : index
    %230 = vector.load %arg5[%c7_165, %c0_166] : memref<8x128xf32, #tpu.memory_space<vmem>>, vector<1x128xf32>
    %231 = vector.broadcast %230 : vector<1x128xf32> to vector<8x128xf32>
    %232 = arith.addf %229, %231 : vector<8x128xf32>
    %c0_167 = arith.constant 0 : index
    %c7_168 = arith.constant 7 : index
    %c0_169 = arith.constant 0 : index
    %233 = vector.load %arg4[%c0_167, %c7_168, %c0_169] : memref<5x8x128xf32, #tpu.memory_space<vmem>>, vector<1x1x128xf32>
    %234 = vector.shape_cast %233 : vector<1x1x128xf32> to vector<1x128xf32>
    %235 = vector.broadcast %234 : vector<1x128xf32> to vector<8x128xf32>
    %236 = arith.mulf %6, %235 : vector<8x128xf32>
    %237 = arith.addf %232, %236 : vector<8x128xf32>
    %c1_170 = arith.constant 1 : index
    %c7_171 = arith.constant 7 : index
    %c0_172 = arith.constant 0 : index
    %238 = vector.load %arg4[%c1_170, %c7_171, %c0_172] : memref<5x8x128xf32, #tpu.memory_space<vmem>>, vector<1x1x128xf32>
    %239 = vector.shape_cast %238 : vector<1x1x128xf32> to vector<1x128xf32>
    %240 = vector.broadcast %239 : vector<1x128xf32> to vector<8x128xf32>
    %241 = arith.mulf %9, %240 : vector<8x128xf32>
    %242 = arith.addf %237, %241 : vector<8x128xf32>
    %c2_173 = arith.constant 2 : index
    %c7_174 = arith.constant 7 : index
    %c0_175 = arith.constant 0 : index
    %243 = vector.load %arg4[%c2_173, %c7_174, %c0_175] : memref<5x8x128xf32, #tpu.memory_space<vmem>>, vector<1x1x128xf32>
    %244 = vector.shape_cast %243 : vector<1x1x128xf32> to vector<1x128xf32>
    %245 = vector.broadcast %244 : vector<1x128xf32> to vector<8x128xf32>
    %246 = arith.mulf %12, %245 : vector<8x128xf32>
    %247 = arith.addf %242, %246 : vector<8x128xf32>
    %c3_176 = arith.constant 3 : index
    %c7_177 = arith.constant 7 : index
    %c0_178 = arith.constant 0 : index
    %248 = vector.load %arg4[%c3_176, %c7_177, %c0_178] : memref<5x8x128xf32, #tpu.memory_space<vmem>>, vector<1x1x128xf32>
    %249 = vector.shape_cast %248 : vector<1x1x128xf32> to vector<1x128xf32>
    %250 = vector.broadcast %249 : vector<1x128xf32> to vector<8x128xf32>
    %251 = arith.mulf %15, %250 : vector<8x128xf32>
    %252 = arith.addf %247, %251 : vector<8x128xf32>
    %c0_179 = arith.constant 0 : index
    %c7_180 = arith.constant 7 : index
    %c0_181 = arith.constant 0 : index
    %c0_182 = arith.constant 0 : index
    %253 = vector.load %arg7[%c0_179, %c7_180, %c0_181, %c0_182] : memref<1x8x8x128xf32, #tpu.memory_space<vmem>>, vector<1x1x8x128xf32>
    %254 = vector.shape_cast %253 : vector<1x1x8x128xf32> to vector<8x128xf32>
    %255 = vector.shape_cast %252 : vector<8x128xf32> to vector<1x1x8x128xf32>
    tpu.vector_store %arg7[%c0_179, %c7_180, %c0_181, %c0_182], %255 {strides = array<i32>} : memref<1x8x8x128xf32, #tpu.memory_space<vmem>>, vector<1x1x8x128xf32>,
    return
  }
  func.func @transform_0(%arg0: i32, %arg1: i32) -> (i32, i32, i32, i32) {
    %c0_i32 = arith.constant 0 : i32
    %c0_i32_0 = arith.constant 0 : i32
    %c0_i32_1 = arith.constant 0 : i32
    return %arg0, %c0_i32, %arg1, %c0_i32_0 : i32, i32, i32, i32
  }
  func.func @transform_1(%arg0: i32, %arg1: i32) -> (i32, i32) {
    %c0_i32 = arith.constant 0 : i32
    %c0_i32_0 = arith.constant 0 : i32
    %c0_i32_1 = arith.constant 0 : i32
    return %c0_i32, %c0_i32_0 : i32, i32
  }
  func.func @transform_2(%arg0: i32, %arg1: i32) -> (i32, i32, i32) {
    %c0_i32 = arith.constant 0 : i32
    %c0_i32_0 = arith.constant 0 : i32
    %c0_i32_1 = arith.constant 0 : i32
    %c0_i32_2 = arith.constant 0 : i32
    return %c0_i32, %c0_i32_0, %c0_i32_1 : i32, i32, i32
  }
  func.func @transform_3(%arg0: i32, %arg1: i32) -> (i32, i32) {
    %c0_i32 = arith.constant 0 : i32
    %c0_i32_0 = arith.constant 0 : i32
    %c0_i32_1 = arith.constant 0 : i32
    return %c0_i32, %c0_i32_0 : i32, i32
  }
  func.func @transform_4(%arg0: i32, %arg1: i32) -> (i32, i32) {
    %c0_i32 = arith.constant 0 : i32
    %c0_i32_0 = arith.constant 0 : i32
    return %arg1, %c0_i32 : i32, i32
  }
  func.func @transform_5(%arg0: i32, %arg1: i32) -> (i32, i32, i32, i32) {
    %c0_i32 = arith.constant 0 : i32
    %c0_i32_0 = arith.constant 0 : i32
    %c0_i32_1 = arith.constant 0 : i32
    return %arg0, %c0_i32, %arg1, %c0_i32_0 : i32, i32, i32, i32
  }
}

</mosaic_0001>

<bundles_post_ra>
// kernel: coord_conv_transpose.1
= control target key start
LH: loop header
LB: loop body
LE: loop exit
PB: predicated region body
PF: predicated region fallthrough
CT: control target
= control target key end

     0   :  { %s3254_s18 = smov 0   ;;  %s3256_s19 = smov 0   ;;  %s3788_s0 = inlined_call_operand.vmem [shape: f32[2,4,8,32], index: 0, kind: input, shape index: {}]   ;;  %s3789_s1 = inlined_call_operand.vmem [shape: f32[32,128], index: 1, kind: input, shape index: {}]   ;;  %s3790_s2 = inlined_call_operand.vmem [shape: f32[5,8,128], index: 2, kind: input, shape index: {}]   ;;  %s3791_s3 = inlined_call_operand.vmem [shape: f32[8,128], index: 3, kind: input, shape index: {}]   ;;  %s3792_s4 = inlined_call_operand.vmem [shape: f32[8,1], index: 4, kind: input, shape index: {}]   ;;  %s3793_s5 = inlined_call_operand.vmem [shape: f32[2,8,8,128], index: 5, kind: output, shape index: {}]  }
   0x1   :  { %s3258_s20 = smov 0  }
   0x2 LB: > { %s27_s21 = sadd.s32 1, %s3215_s19  ;;  %p2686_p0 = scmp.ge.s32.totalorder %s3219_s20, 1  ;;  %s3219_s20 = sphi %s3258_s20, %s15_s20   ;;  %s3215_s19 = sphi %s3256_s19, %s3795_s19   ;;  %s3211_s18 = sphi %s3254_s18, %s3794_s18  }
   0x3   : > { %p29_p1 = scmp.ge.s32.totalorder %s27_s21, 2  ;;  %p215_p2 = scmp.lt.s32.totalorder %s3219_s20, 3 }
   0x5   : > { %s3797_s21 = smov (%p29_p1, %s27_s21), 0  ;;  %p216_p3 = pnand %p2686_p0, %p215_p2 }
   0x6   : > { %p253_p4 = scmp.lt.s32.totalorder (!%p216_p3), %s3211_s18, 1 }
   0x7   : > { %219 = sbr.rel (%p216_p3) target bundleno = 342 (0x156), region = 40 }
   0xc   : > { %v276_v0 = vld [vmem:[%s3789_s1 + $0x18] sm:$0xff]  ;;  %v275_v1 = vld [vmem:[%s3789_s1 + $0x10] sm:$0xff]  ;;  %v274_v2 = vld [vmem:[%s3789_s1 + $0x8] sm:$0xff]  ;;  %v3221_v3 = vmov 0.0   ;;  %vm3222_vm0 = vmmov 0   ;;  %s3799_s18 = smov (!%p253_p4, %s3211_s18), 1 }
   0xd   : > { %2905 = vmatprep.subr.mxu0 %v3221_v3  ;;  %v3282_v4 = vand.u32 4294901760, %v276_v0  ;;  %2916 = vmatprep.subr.mxu1 %v3221_v3  ;;  %v3285_v5 = vand.u32 4294901760, %v275_v1  ;;  %v3287_v6 = vand.u32 4294901760, %v274_v2  ;;  %v273_v7 = vld [vmem:[%s3789_s1] sm:$0xff]  ;;  %v3223_v13 = vmov 0   ;;  %s2783_s7 = sshll.u32 %s3799_s18, 5 }
   0xe   : > { %v277_v8 = vld [vmem:[%s3792_s4] sm:$0xff]  ;;  %v3295_v9 = vand.u32 4294901760, %v273_v7  ;;  %2913 = vmatprep.mubr.msk.f32.mxu0 %vm3222_vm0, %v3221_v3  ;;  %2924 = vmatprep.mubr.msk.f32.mxu1 %vm3222_vm0, %v3221_v3  ;;  %vm284_vm1 = vcmask 261120   ;;  %s3331_s10 = scalar_lea.vmem %s3788_s0, %s2783_s7  ;;  %s2784_s7 = sshll.u32 %s3799_s18, 6 }
   0xf   : > { %2906 = vmatpush3.msra.mxu0 %v3282_v4  ;;  %v3305_v10 = vsub.f32 %v276_v0, %v3282_v4  ;;  %v3308_v11 = vsub.f32 %v275_v1, %v3285_v5  ;;  %v3311_v12 = vsub.f32 %v274_v2, %v3287_v6  ;;  %3196 = vset.pattern.permute.xlu0 %v3223_v13  ;;  %v283_v19 = vld [vmem:[%s3331_s10] sm:$0xff]  ;;  %v2693_v24 = vld [vmem:[%s3331_s10 + $0x18] sm:$0xff]  ;;  %v2691_v36 = vld [vmem:[%s3331_s10 + $0x8] sm:$0xff]  ;;  %s272_s29 = scalar_lea.vmem %s3793_s5, %s2784_s7 }
  0x10   : > { %2907 = vmatprep.subr.mxu0 %v3221_v3  ;;  %v3315_v14 = vsub.f32 %v273_v7, %v3295_v9  ;;  %280 = vperm.xlu0 %3196, %v277_v8   ;;  %v286_v23 = vsel %vm284_vm1, %v283_v19, 0  ;;  %v3360_v30 = vsel %vm284_vm1, %v2693_v24, 0  ;;  %v776_v37 = vsel %vm284_vm1, %v2691_v36, 0  ;;  %v2692_v43 = vld [vmem:[%s3331_s10 + $0x10] sm:$0xff]  ;;  %v2695_v13 = vld [vmem:[%s3790_s2 + $0x20] ss:$0 sm:$0xff] }
  0x11   : > { %v3319_v15 = vand.u32 4294901760, %v3305_v10  ;;  %2908 = vmatpush3.msra.mxu0 %v3285_v5  ;;  %v3323_v16 = vand.u32 4294901760, %v3308_v11  ;;  %v3326_v17 = vand.u32 4294901760, %v3311_v12  ;;  %v3348_v25 = vand.u32 4294901760, %v286_v23  ;;  %v2739_v36 = vld [vmem:[%s3791_s3 + $0x4] ss:$0 sm:$0xff] }
  0x12   : > { %2909 = vmatprep.subr.mxu0 %v3221_v3  ;;  %v3335_v18 = vand.u32 4294901760, %v3315_v14  ;;  %v3392_v38 = vand.u32 4294901760, %v776_v37  ;;  %v1266_v44 = vsel %vm284_vm1, %v2692_v43, 0  ;;  %v3527_v50 = vand.u32 4294901760, %v3360_v30  ;;  %v2772_v43 = vld [vmem:[%s3791_s3 + $0x7] ss:$0 sm:$0xff] }
  0x13   : > { %v395_v20 = vsub.f32 %v3305_v10, %v3319_v15  ;;  %v402_v21 = vsub.f32 %v3308_v11, %v3323_v16  ;;  %2910 = vmatpush3.msra.mxu0 %v3287_v6  ;;  %v409_v22 = vsub.f32 %v3311_v12, %v3326_v17  ;;  %v358_v29 = vsub.f32 %v286_v23, %v3348_v25 }
  0x14   : > { %2911 = vmatprep.subr.mxu0 %v3221_v3  ;;  %v416_v28 = vsub.f32 %v3315_v14, %v3335_v18  ;;  %v848_v39 = vsub.f32 %v776_v37, %v3392_v38  ;;  %v3460_v45 = vand.u32 4294901760, %v1266_v44  ;;  %v1828_v51 = vsub.f32 %v3360_v30, %v3527_v50 }
  0x15   : > { %v3350_v26 = vand.u32 4294901760, %v395_v20  ;;  %v3352_v27 = vand.u32 4294901760, %v402_v21  ;;  %2912 = vmatpush3.msra.mxu0 %v3295_v9  ;;  %v3363_v31 = vand.u32 4294901760, %v409_v22  ;;  %v359_v32 = vand.u32 4294901760, %v358_v29  ;;  %v2749_v20 = vld [vmem:[%s3790_s2 + $0x25] ss:$0 sm:$0xff] }
  0x16   : > { %2927 = vmatprep.subr.mxu0 %v3221_v3  ;;  %v3367_v33 = vand.u32 4294901760, %v416_v28  ;;  %v849_v40 = vand.u32 4294901760, %v848_v39  ;;  %v1338_v46 = vsub.f32 %v1266_v44, %v3460_v45  ;;  %v1829_v52 = vand.u32 4294901760, %v1828_v51  ;;  %v2760_v21 = vld [vmem:[%s3790_s2 + $0x26] ss:$0 sm:$0xff] }
  0x17   : > { %2917 = vmatpush3.msra.mxu1 %v3350_v26  ;;  %v360_v34 = vsub.f32 %v358_v29, %v359_v32  ;;  %v2771_v22 = vld [vmem:[%s3790_s2 + $0x27] ss:$0 sm:$0xff]  ;;  %v2706_v28 = vld [vmem:[%s3791_s3 + $0x1] ss:$0 sm:$0xff] }
  0x18   : > { %2918 = vmatprep.subr.mxu1 %v3221_v3  ;;  %v850_v41 = vsub.f32 %v848_v39, %v849_v40  ;;  %v1339_v47 = vand.u32 4294901760, %v1338_v46  ;;  %v1830_v53 = vsub.f32 %v1828_v51, %v1829_v52 }
  0x19   : > { %2919 = vmatpush3.msra.mxu1 %v3352_v27  ;;  %v361_v35 = vand.u32 4294901760, %v360_v34  ;;  %v2717_v34 = vld [vmem:[%s3791_s3 + $0x2] ss:$0 sm:$0xff] }
  0x1a   : > { %2920 = vmatprep.subr.mxu1 %v3221_v3  ;;  %v851_v42 = vand.u32 4294901760, %v850_v41  ;;  %v1340_v48 = vsub.f32 %v1338_v46, %v1339_v47  ;;  %v1831_v54 = vand.u32 4294901760, %v1830_v53  ;;  %v2750_v41 = vld [vmem:[%s3791_s3 + $0x5] ss:$0 sm:$0xff] }
  0x1b   : > { %2921 = vmatpush3.msra.mxu1 %v3363_v31  ;;  %2914 = vmatmul.mubr.f32.vlgmr.msra.gmra.mxu0 %v361_v35  ;;  %v2728_v35 = vld [vmem:[%s3791_s3 + $0x3] ss:$0 sm:$0xff] }
  0x1c   : > { %2922 = vmatprep.subr.mxu1 %v3221_v3  ;;  %2928 = vmatpush3.msra.mxu0 %v3305_v10  ;;  %v1341_v49 = vand.u32 4294901760, %v1340_v48 }
  0x1d   : > { %2923 = vmatpush3.msra.mxu1 %v3367_v33  ;;  %2929 = vmatprep.subr.mxu0 %v3221_v3 }
  0x1e   : > { %2925 = vmatmul.mubr.f32.vlgmr.msra.gmra.mxu1 %v3348_v25  ;;  %2938 = vmatprep.subr.mxu1 %v3221_v3 }
  0x1f   : > { %2939 = vmatpush3.msra.mxu1 %v3282_v4  ;;  %2930 = vmatpush3.msra.mxu0 %v3308_v11 }
  0x20   : > { %2940 = vmatprep.subr.mxu1 %v3221_v3  ;;  %2931 = vmatprep.subr.mxu0 %v3221_v3 }
  0x21   : > { %2941 = vmatpush3.msra.mxu1 %v3285_v5  ;;  %2932 = vmatpush3.msra.mxu0 %v3311_v12 }
  0x22   : > { %2942 = vmatprep.subr.mxu1 %v3221_v3  ;;  %2933 = vmatprep.subr.mxu0 %v3221_v3 }
  0x23   : > { %2943 = vmatpush3.msra.mxu1 %v3287_v6  ;;  %2934 = vmatpush3.msra.mxu0 %v3315_v14 }
  0x24   : > { %2935 = vmatprep.mubr.msk.f32.mxu0 %vm3222_vm0, %v3221_v3  ;;  %2944 = vmatprep.subr.mxu1 %v3221_v3 }
  0x25   : > { %2936 = vmatmul.mubr.f32.vlgmr.msra.gmra.mxu0 %v358_v29  ;;  %2945 = vmatpush3.msra.mxu1 %v3295_v9 }
  0x26   : > { %2946 = vmatprep.mubr.msk.f32.mxu1 %vm3222_vm0, %v3221_v3  ;;  %2949 = vmatprep.subr.mxu0 %v3221_v3 }
  0x27   : > { %2947 = vmatmul.mubr.f32.vlgmr.msra.gmra.mxu1 %v359_v32  ;;  %2950 = vmatpush3.msra.mxu0 %v3319_v15 }
  0x28   : > { %2960 = vmatprep.subr.mxu1 %v3221_v3  ;;  %2951 = vmatprep.subr.mxu0 %v3221_v3 }
  0x29   : > { %2961 = vmatpush3.msra.mxu1 %v3282_v4  ;;  %2952 = vmatpush3.msra.mxu0 %v3323_v16 }
  0x2a   : > { %2962 = vmatprep.subr.mxu1 %v3221_v3  ;;  %2953 = vmatprep.subr.mxu0 %v3221_v3 }
  0x2b   : > { %2963 = vmatpush3.msra.mxu1 %v3285_v5  ;;  %2954 = vmatpush3.msra.mxu0 %v3326_v17 }
  0x2c   : > { %2964 = vmatprep.subr.mxu1 %v3221_v3  ;;  %2955 = vmatprep.subr.mxu0 %v3221_v3 }
  0x2d   : > { %2965 = vmatpush3.msra.mxu1 %v3287_v6  ;;  %2956 = vmatpush3.msra.mxu0 %v3335_v18 }
  0x2e   : > { %2957 = vmatprep.mubr.msk.f32.mxu0 %vm3222_vm0, %v3221_v3  ;;  %2966 = vmatprep.subr.mxu1 %v3221_v3 }
  0x2f   : > { %2958 = vmatmul.mubr.f32.vlgmr.msra.gmra.mxu0 %v3348_v25  ;;  %2967 = vmatpush3.msra.mxu1 %v3295_v9 }
  0x30   : > { %2968 = vmatprep.mubr.msk.f32.mxu1 %vm3222_vm0, %v3221_v3  ;;  %2971 = vmatprep.subr.mxu0 %v3221_v3 }
  0x31   : > { %2969 = vmatmul.mubr.f32.vlgmr.msra.gmra.mxu1 %v3348_v25  ;;  %2972 = vmatpush3.msra.mxu0 %v3282_v4 }
  0x32   : > { %2982 = vmatprep.subr.mxu1 %v3221_v3  ;;  %2973 = vmatprep.subr.mxu0 %v3221_v3 }
  0x33   : > { %2983 = vmatpush3.msra.mxu1 %v3350_v26  ;;  %2974 = vmatpush3.msra.mxu0 %v3285_v5 }
  0x34   : > { %2984 = vmatprep.subr.mxu1 %v3221_v3  ;;  %2975 = vmatprep.subr.mxu0 %v3221_v3 }
  0x35   : > { %2985 = vmatpush3.msra.mxu1 %v3352_v27  ;;  %2976 = vmatpush3.msra.mxu0 %v3287_v6 }
  0x36   : > { %2986 = vmatprep.subr.mxu1 %v3221_v3  ;;  %2977 = vmatprep.subr.mxu0 %v3221_v3 }
  0x37   : > { %2987 = vmatpush3.msra.mxu1 %v3363_v31  ;;  %2978 = vmatpush3.msra.mxu0 %v3295_v9 }
  0x38   : > { %2979 = vmatprep.mubr.msk.f32.mxu0 %vm3222_vm0, %v3221_v3  ;;  %2988 = vmatprep.subr.mxu1 %v3221_v3 }
  0x39   : > { %2980 = vmatmul.mubr.f32.vlgmr.msra.gmra.mxu0 %v851_v42  ;;  %2989 = vmatpush3.msra.mxu1 %v3367_v33  ;;  %v2761_v42 = vld [vmem:[%s3791_s3 + $0x6] ss:$0 sm:$0xff] }
  0x3a   : > { %2990 = vmatprep.mubr.msk.f32.mxu1 %vm3222_vm0, %v3221_v3  ;;  %2993 = vmatprep.subr.mxu0 %v3221_v3 }
  0x3b   : > { %2991 = vmatmul.mubr.f32.vlgmr.msra.gmra.mxu1 %v3392_v38  ;;  %2994 = vmatpush3.msra.mxu0 %v3305_v10 }
  0x3c   : > { %3004 = vmatprep.subr.mxu1 %v3221_v3  ;;  %2995 = vmatprep.subr.mxu0 %v3221_v3 }
  0x3d   : > { %3005 = vmatpush3.msra.mxu1 %v3282_v4  ;;  %2996 = vmatpush3.msra.mxu0 %v3308_v11 }
  0x3e   : > { %3006 = vmatprep.subr.mxu1 %v3221_v3  ;;  %2997 = vmatprep.subr.mxu0 %v3221_v3 }
  0x3f   : > { %3007 = vmatpush3.msra.mxu1 %v3285_v5  ;;  %2998 = vmatpush3.msra.mxu0 %v3311_v12 }
  0x40   : > { %3008 = vmatprep.subr.mxu1 %v3221_v3  ;;  %2999 = vmatprep.subr.mxu0 %v3221_v3 }
  0x41   : > { %3009 = vmatpush3.msra.mxu1 %v3287_v6  ;;  %3000 = vmatpush3.msra.mxu0 %v3315_v14 }
  0x42   : > { %3001 = vmatprep.mubr.msk.f32.mxu0 %vm3222_vm0, %v3221_v3  ;;  %3010 = vmatprep.subr.mxu1 %v3221_v3 }
  0x43   : > { %3002 = vmatmul.mubr.f32.vlgmr.msra.gmra.mxu0 %v848_v39  ;;  %3011 = vmatpush3.msra.mxu1 %v3295_v9 }
  0x44   : > { %3012 = vmatprep.mubr.msk.f32.mxu1 %vm3222_vm0, %v3221_v3  ;;  %3015 = vmatprep.subr.mxu0 %v3221_v3 }
  0x45   : > { %3013 = vmatmul.mubr.f32.vlgmr.msra.gmra.mxu1 %v849_v40  ;;  %3016 = vmatpush3.msra.mxu0 %v3319_v15 }
  0x46   : > { %3026 = vmatprep.subr.mxu1 %v3221_v3  ;;  %3017 = vmatprep.subr.mxu0 %v3221_v3 }
  0x47   : > { %3027 = vmatpush3.msra.mxu1 %v3282_v4  ;;  %3018 = vmatpush3.msra.mxu0 %v3323_v16 }
  0x48   : > { %3028 = vmatprep.subr.mxu1 %v3221_v3  ;;  %3019 = vmatprep.subr.mxu0 %v3221_v3 }
  0x49   : > { %3029 = vmatpush3.msra.mxu1 %v3285_v5  ;;  %3020 = vmatpush3.msra.mxu0 %v3326_v17 }
  0x4a   : > { %3030 = vmatprep.subr.mxu1 %v3221_v3  ;;  %3021 = vmatprep.subr.mxu0 %v3221_v3 }
  0x4b   : > { %3031 = vmatpush3.msra.mxu1 %v3287_v6  ;;  %3022 = vmatpush3.msra.mxu0 %v3335_v18 }
  0x4c   : > { %3023 = vmatprep.mubr.msk.f32.mxu0 %vm3222_vm0, %v3221_v3  ;;  %3032 = vmatprep.subr.mxu1 %v3221_v3 }
  0x4d   : > { %3024 = vmatmul.mubr.f32.vlgmr.msra.gmra.mxu0 %v3392_v38  ;;  %3033 = vmatpush3.msra.mxu1 %v3295_v9 }
  0x4e   : > { %3034 = vmatprep.mubr.msk.f32.mxu1 %vm3222_vm0, %v3221_v3  ;;  %3037 = vmatprep.subr.mxu0 %v3221_v3 }
  0x4f   : > { %3035 = vmatmul.mubr.f32.vlgmr.msra.gmra.mxu1 %v3392_v38  ;;  %3038 = vmatpush3.msra.mxu0 %v3282_v4 }
  0x50   : > { %3048 = vmatprep.subr.mxu1 %v3221_v3  ;;  %3039 = vmatprep.subr.mxu0 %v3221_v3 }
  0x51   : > { %3049 = vmatpush3.msra.mxu1 %v3350_v26  ;;  %3040 = vmatpush3.msra.mxu0 %v3285_v5 }
  0x52   : > { %3050 = vmatprep.subr.mxu1 %v3221_v3  ;;  %3041 = vmatprep.subr.mxu0 %v3221_v3 }
  0x53   : > { %3051 = vmatpush3.msra.mxu1 %v3352_v27  ;;  %3042 = vmatpush3.msra.mxu0 %v3287_v6 }
  0x54   : > { %3052 = vmatprep.subr.mxu1 %v3221_v3  ;;  %3043 = vmatprep.subr.mxu0 %v3221_v3 }
  0x55   : > { %3053 = vmatpush3.msra.mxu1 %v3363_v31  ;;  %3044 = vmatpush3.msra.mxu0 %v3295_v9 }
  0x56   : > { %3045 = vmatprep.mubr.msk.f32.mxu0 %vm3222_vm0, %v3221_v3  ;;  %3054 = vmatprep.subr.mxu1 %v3221_v3 }
  0x57   : > { %3046 = vmatmul.mubr.f32.vlgmr.msra.gmra.mxu0 %v1341_v49  ;;  %3055 = vmatpush3.msra.mxu1 %v3367_v33  ;;  %v2751_v49 = vld [vmem:[%s3790_s2 + $0x5] ss:$0 sm:$0xff] }
  0x58   : > { %3056 = vmatprep.mubr.msk.f32.mxu1 %vm3222_vm0, %v3221_v3  ;;  %3059 = vmatprep.subr.mxu0 %v3221_v3 }
  0x59   : > { %3057 = vmatmul.mubr.f32.vlgmr.msra.gmra.mxu1 %v3460_v45  ;;  %3060 = vmatpush3.msra.mxu0 %v3305_v10 }
  0x5a   : > { %3070 = vmatprep.subr.mxu1 %v3221_v3  ;;  %3061 = vmatprep.subr.mxu0 %v3221_v3 }
  0x5b   : > { %3071 = vmatpush3.msra.mxu1 %v3282_v4  ;;  %3062 = vmatpush3.msra.mxu0 %v3308_v11 }
  0x5c   : > { %3072 = vmatprep.subr.mxu1 %v3221_v3  ;;  %3063 = vmatprep.subr.mxu0 %v3221_v3 }
  0x5d   : > { %3073 = vmatpush3.msra.mxu1 %v3285_v5  ;;  %3064 = vmatpush3.msra.mxu0 %v3311_v12 }
  0x5e   : > { %3074 = vmatprep.subr.mxu1 %v3221_v3  ;;  %3065 = vmatprep.subr.mxu0 %v3221_v3 }
  0x5f   : > { %3075 = vmatpush3.msra.mxu1 %v3287_v6  ;;  %3066 = vmatpush3.msra.mxu0 %v3315_v14 }
  0x60   : > { %3067 = vmatprep.mubr.msk.f32.mxu0 %vm3222_vm0, %v3221_v3  ;;  %3076 = vmatprep.subr.mxu1 %v3221_v3 }
  0x61   : > { %3068 = vmatmul.mubr.f32.vlgmr.msra.gmra.mxu0 %v1338_v46  ;;  %3077 = vmatpush3.msra.mxu1 %v3295_v9  ;;  %v2729_v46 = vld [vmem:[%s3790_s2 + $0x3] ss:$0 sm:$0xff] }
  0x62   : > { %3078 = vmatprep.mubr.msk.f32.mxu1 %vm3222_vm0, %v3221_v3  ;;  %3081 = vmatprep.subr.mxu0 %v3221_v3 }
  0x63   : > { %3079 = vmatmul.mubr.f32.vlgmr.msra.gmra.mxu1 %v1339_v47  ;;  %3082 = vmatpush3.msra.mxu0 %v3319_v15  ;;  %v2740_v47 = vld [vmem:[%s3790_s2 + $0x4] ss:$0 sm:$0xff] }
  0x64   : > { %3092 = vmatprep.subr.mxu1 %v3221_v3  ;;  %3083 = vmatprep.subr.mxu0 %v3221_v3 }
  0x65   : > { %3093 = vmatpush3.msra.mxu1 %v3282_v4  ;;  %3084 = vmatpush3.msra.mxu0 %v3323_v16 }
  0x66   : > { %3094 = vmatprep.subr.mxu1 %v3221_v3  ;;  %3085 = vmatprep.subr.mxu0 %v3221_v3 }
  0x67   : > { %3095 = vmatpush3.msra.mxu1 %v3285_v5  ;;  %3086 = vmatpush3.msra.mxu0 %v3326_v17 }
  0x68   : > { %3096 = vmatprep.subr.mxu1 %v3221_v3  ;;  %3087 = vmatprep.subr.mxu0 %v3221_v3 }
  0x69   : > { %3097 = vmatpush3.msra.mxu1 %v3287_v6  ;;  %3088 = vmatpush3.msra.mxu0 %v3335_v18 }
  0x6a   : > { %3089 = vmatprep.mubr.msk.f32.mxu0 %vm3222_vm0, %v3221_v3  ;;  %3098 = vmatprep.subr.mxu1 %v3221_v3 }
  0x6b   : > { %3090 = vmatmul.mubr.f32.vlgmr.msra.gmra.mxu0 %v3460_v45  ;;  %3099 = vmatpush3.msra.mxu1 %v3295_v9 }
  0x6c   : > { %3100 = vmatprep.mubr.msk.f32.mxu1 %vm3222_vm0, %v3221_v3  ;;  %3103 = vmatprep.subr.mxu0 %v3221_v3 }
  0x6d   : > { %3101 = vmatmul.mubr.f32.vlgmr.msra.gmra.mxu1 %v3460_v45  ;;  %3104 = vmatpush3.msra.mxu0 %v3282_v4  ;;  %v2718_v45 = vld [vmem:[%s3790_s2 + $0x2] ss:$0 sm:$0xff] }
  0x6e   : > { %3114 = vmatprep.subr.mxu1 %v3221_v3  ;;  %3105 = vmatprep.subr.mxu0 %v3221_v3 }
  0x6f   : > { %3115 = vmatpush3.msra.mxu1 %v3350_v26  ;;  %3106 = vmatpush3.msra.mxu0 %v3285_v5  ;;  %v2696_v26 = vld [vmem:[%s3791_s3] ss:$0 sm:$0xff] }
  0x70   : > { %3116 = vmatprep.subr.mxu1 %v3221_v3  ;;  %3107 = vmatprep.subr.mxu0 %v3221_v3 }
  0x71   : > { %3117 = vmatpush3.msra.mxu1 %v3352_v27  ;;  %3108 = vmatpush3.msra.mxu0 %v3287_v6  ;;  %v2697_v27 = vld [vmem:[%s3790_s2] ss:$0 sm:$0xff] }
  0x72   : > { %3118 = vmatprep.subr.mxu1 %v3221_v3  ;;  %3109 = vmatprep.subr.mxu0 %v3221_v3 }
  0x73   : > { %3119 = vmatpush3.msra.mxu1 %v3363_v31  ;;  %3110 = vmatpush3.msra.mxu0 %v3295_v9 }
  0x74   : > { %3111 = vmatprep.mubr.msk.f32.mxu0 %vm3222_vm0, %v3221_v3  ;;  %3120 = vmatprep.subr.mxu1 %v3221_v3 }
  0x75   : > { %3112 = vmatmul.mubr.f32.vlgmr.msra.gmra.mxu0 %v1831_v54  ;;  %3121 = vmatpush3.msra.mxu1 %v3367_v33  ;;  %v2707_v33 = vld [vmem:[%s3790_s2 + $0x1] ss:$0 sm:$0xff] }
  0x76   : > { %3122 = vmatprep.mubr.msk.f32.mxu1 %vm3222_vm0, %v3221_v3  ;;  %3125 = vmatprep.subr.mxu0 %v3221_v3 }
  0x77   : > { %3123 = vmatmul.mubr.f32.vlgmr.msra.gmra.mxu1 %v3527_v50  ;;  %3126 = vmatpush3.msra.mxu0 %v3305_v10 }
  0x78   : > { %3136 = vmatprep.subr.mxu1 %v3221_v3  ;;  %3127 = vmatprep.subr.mxu0 %v3221_v3 }
  0x79   : > { %3137 = vmatpush3.msra.mxu1 %v3282_v4  ;;  %3128 = vmatpush3.msra.mxu0 %v3308_v11 }
  0x7a   : > { %3138 = vmatprep.subr.mxu1 %v3221_v3  ;;  %3129 = vmatprep.subr.mxu0 %v3221_v3 }
  0x7b   : > { %3139 = vmatpush3.msra.mxu1 %v3285_v5  ;;  %3130 = vmatpush3.msra.mxu0 %v3311_v12 }
  0x7c   : > { %3140 = vmatprep.subr.mxu1 %v3221_v3  ;;  %3131 = vmatprep.subr.mxu0 %v3221_v3 }
  0x7d   : > { %3141 = vmatpush3.msra.mxu1 %v3287_v6  ;;  %3132 = vmatpush3.msra.mxu0 %v3315_v14  ;;  %v2705_v14 = vld [vmem:[%s3790_s2 + $0x21] ss:$0 sm:$0xff] }
  0x7e   : > { %3133 = vmatprep.mubr.msk.f32.mxu0 %vm3222_vm0, %v3221_v3  ;;  %3142 = vmatprep.subr.mxu1 %v3221_v3 }
  0x7f   : > { %3134 = vmatmul.mubr.f32.vlgmr.msra.gmra.mxu0 %v1828_v51  ;;  %3143 = vmatpush3.msra.mxu1 %v3295_v9  ;;  %v2773_v51 = vld [vmem:[%s3790_s2 + $0x7] ss:$0 sm:$0xff] }
  0x80   : > { %3144 = vmatprep.mubr.msk.f32.mxu1 %vm3222_vm0, %v3221_v3  ;;  %3147 = vmatprep.subr.mxu0 %v3221_v3 }
  0x81   : > { %3145 = vmatmul.mubr.f32.vlgmr.msra.gmra.mxu1 %v1829_v52  ;;  %3148 = vmatpush3.msra.mxu0 %v3319_v15 }
  0x82   : > { %3158 = vmatprep.subr.mxu1 %v3221_v3  ;;  %3149 = vmatprep.subr.mxu0 %v3221_v3 }
  0x83   : > { %3159 = vmatpush3.msra.mxu1 %v3282_v4  ;;  %3150 = vmatpush3.msra.mxu0 %v3323_v16  ;;  %v2716_v16 = vld [vmem:[%s3790_s2 + $0x22] ss:$0 sm:$0xff] }
  0x84   : > { %3160 = vmatprep.subr.mxu1 %v3221_v3  ;;  %3151 = vmatprep.subr.mxu0 %v3221_v3 }
  0x85   : > { %3161 = vmatpush3.msra.mxu1 %v3285_v5  ;;  %3152 = vmatpush3.msra.mxu0 %v3326_v17  ;;  %v2727_v17 = vld [vmem:[%s3790_s2 + $0x23] ss:$0 sm:$0xff] }
  0x86   : > { %3162 = vmatprep.subr.mxu1 %v3221_v3  ;;  %3153 = vmatprep.subr.mxu0 %v3221_v3 }
  0x87   : > { %3163 = vmatpush3.msra.mxu1 %v3287_v6  ;;  %3154 = vmatpush3.msra.mxu0 %v3335_v18  ;;  %v2738_v18 = vld [vmem:[%s3790_s2 + $0x24] ss:$0 sm:$0xff] }
  0x88   : > { %3155 = vmatprep.mubr.msk.f32.mxu0 %vm3222_vm0, %v3221_v3  ;;  %3164 = vmatprep.subr.mxu1 %v3221_v3 }
  0x89   : > { %3156 = vmatmul.mubr.f32.vlgmr.msra.gmra.mxu0 %v3527_v50  ;;  %3165 = vmatpush3.msra.mxu1 %v3295_v9 }
  0x8a   : > { %3166 = vmatprep.mubr.msk.f32.mxu1 %vm3222_vm0, %v3221_v3 }
  0x8b   : > { %3167 = vmatmul.mubr.f32.vlgmr.msra.gmra.mxu1 %v3527_v50  ;;  %v281_v15 = vpop.permute.xlu0 %280  ;;  %v2762_v50 = vld [vmem:[%s3790_s2 + $0x6] ss:$0 sm:$0xff] }
  0x8c   : > { %v2249_v23 = vmul.f32 %v2695_v13, %v281_v15  ;;  %v2293_v29 = vmul.f32 %v2705_v14, %v281_v15  ;;  %v2335_v30 = vmul.f32 %v2716_v16, %v281_v15  ;;  %v2377_v31 = vmul.f32 %v2727_v17, %v281_v15 }
  0x8d   : > { %v2419_v32 = vmul.f32 %v2738_v18, %v281_v15  ;;  %v2461_v37 = vmul.f32 %v2749_v20, %v281_v15  ;;  %v2503_v38 = vmul.f32 %v2760_v21, %v281_v15  ;;  %v2545_v39 = vmul.f32 %v2771_v22, %v281_v15  ;;  %v2753_v18 = vld [vmem:[%s3790_s2 + $0xd] ss:$0 sm:$0xff]  ;;  %v2775_v20 = vld [vmem:[%s3790_s2 + $0xf] ss:$0 sm:$0xff] }
  0x8e   : > { %v2255_v48 = vadd.f32 %v2696_v26, %v2249_v23  ;;  %v2299_v52 = vadd.f32 %v2706_v28, %v2293_v29  ;;  %v2341_v53 = vadd.f32 %v2717_v34, %v2335_v30  ;;  %v2383_v54 = vadd.f32 %v2728_v35, %v2377_v31 }
  0xdb   : > { %v363_v55 = vpop.f32.mrf.mxu0 }
  0xdd   : > { %v2915_v58 = vpop.f32.mrf.mxu0 }
  0xde   : > { %v454_v56 = vpop.f32.mrf.mxu1  ;;  %v2509_v58 = vadd.f32 %v2761_v42, %v2503_v38 }
  0xdf   : > { %v455_v57 = vadd.f32 %v454_v56, %v363_v55  ;;  %v2425_v55 = vadd.f32 %v2739_v36, %v2419_v32 }
  0xe0   : > { %v2926_v59 = vpop.f32.mrf.mxu1 }
  0xe1   : > { %v2551_v59 = vadd.f32 %v2772_v43, %v2545_v39 }
  0xe5   : > { %v534_v60 = vpop.f32.mrf.mxu0 }
  0xe6   : > { %v535_v61 = vadd.f32 %v534_v60, %v455_v57  ;;  %v2467_v57 = vadd.f32 %v2750_v41, %v2461_v37 }
  0xe7   : > { %v611_v62 = vpop.f32.mrf.mxu1  ;;  %v2937_v63 = vpop.f32.mrf.mxu0 }
  0xe8   : > { %v612_v0 = vadd.f32 %v611_v62, %v535_v61 }
  0xe9   : > { %v2948_v1 = vpop.f32.mrf.mxu1 }
  0xef   : > { %v694_v2 = vpop.f32.mrf.mxu0 }
  0xf0   : > { %v695_v4 = vadd.f32 %v694_v2, %v612_v0 }
  0xf1   : > { %v769_v5 = vpop.f32.mrf.mxu1  ;;  %v2959_v6 = vpop.f32.mrf.mxu0 }
  0xf2   : > { %v770_v7 = vadd.f32 %v769_v5, %v695_v4 }
  0xf3   : > { %v2970_v8 = vpop.f32.mrf.mxu1 }
  0xf4   : > { %v2261_v56 = vmul.f32 %v2697_v27, %v770_v7  ;;  %v2305_v60 = vmul.f32 %v2707_v33, %v770_v7  ;;  %v2347_v61 = vmul.f32 %v2718_v45, %v770_v7  ;;  %v2389_v62 = vmul.f32 %v2729_v46, %v770_v7  ;;  %v2699_v8 = vld [vmem:[%s3790_s2 + $0x8] ss:$0 sm:$0xff] }
  0xf5   : > { %v2431_v0 = vmul.f32 %v2740_v47, %v770_v7  ;;  %v2473_v1 = vmul.f32 %v2751_v49, %v770_v7  ;;  %v2515_v2 = vmul.f32 %v2762_v50, %v770_v7  ;;  %v2557_v4 = vmul.f32 %v2773_v51, %v770_v7  ;;  %v2731_v7 = vld [vmem:[%s3790_s2 + $0xb] ss:$0 sm:$0xff] }
  0xf6   : > { %v2306_v14 = vadd.f32 %v2305_v60, %v2299_v52  ;;  %v2348_v15 = vadd.f32 %v2347_v61, %v2341_v53  ;;  %v2390_v16 = vadd.f32 %v2389_v62, %v2383_v54 }
  0xf7   : > { %v2432_v21 = vadd.f32 %v2431_v0, %v2425_v55  ;;  %v2474_v22 = vadd.f32 %v2473_v1, %v2467_v57  ;;  %v2516_v23 = vadd.f32 %v2515_v2, %v2509_v58 }
  0xf9   : > { %v853_v3 = vpop.f32.mrf.mxu0 }
  0xfb   : > { %v944_v9 = vpop.f32.mrf.mxu1  ;;  %v2981_v10 = vpop.f32.mrf.mxu0 }
  0xfc   : > { %v945_v11 = vadd.f32 %v944_v9, %v853_v3  ;;  %v2709_v3 = vld [vmem:[%s3790_s2 + $0x9] ss:$0 sm:$0xff]  ;;  %v2262_v9 = vadd.f32 %v2261_v56, %v2255_v48 }
  0xfd   : > { %v2992_v12 = vpop.f32.mrf.mxu1 }
  0xfe   : > { %v2742_v12 = vld [vmem:[%s3790_s2 + $0xc] ss:$0 sm:$0xff] }
 0x103   : > { %v1024_v19 = vpop.f32.mrf.mxu0 }
 0x104   : > { %v1025_v44 = vadd.f32 %v1024_v19, %v945_v11  ;;  %v2720_v11 = vld [vmem:[%s3790_s2 + $0xa] ss:$0 sm:$0xff]  ;;  %v2764_v19 = vld [vmem:[%s3790_s2 + $0xe] ss:$0 sm:$0xff] }
 0x105   : > { %v1101_v24 = vpop.f32.mrf.mxu1  ;;  %v3003_v25 = vpop.f32.mrf.mxu0 }
 0x106   : > { %v1102_v63 = vadd.f32 %v1101_v24, %v1025_v44  ;;  %v2558_v24 = vadd.f32 %v2557_v4, %v2551_v59 }
 0x107   : > { %v3014_v40 = vpop.f32.mrf.mxu1 }
 0x10d   : > { %v1184_v5 = vpop.f32.mrf.mxu0 }
 0x10e   : > { %v1185_v6 = vadd.f32 %v1184_v5, %v1102_v63  ;;  %v2701_v5 = vld [vmem:[%s3790_s2 + $0x10] ss:$0 sm:$0xff] }
 0x10f   : > { %v1259_v10 = vpop.f32.mrf.mxu1  ;;  %v3025_v13 = vpop.f32.mrf.mxu0 }
 0x110   : > { %v1260_v17 = vadd.f32 %v1259_v10, %v1185_v6  ;;  %v2711_v6 = vld [vmem:[%s3790_s2 + $0x11] ss:$0 sm:$0xff]  ;;  %v2744_v10 = vld [vmem:[%s3790_s2 + $0x14] ss:$0 sm:$0xff] }
 0x111   : > { %v3036_v25 = vpop.f32.mrf.mxu1 }
 0x112   : > { %v2269_v26 = vmul.f32 %v2699_v8, %v1260_v17  ;;  %v2312_v27 = vmul.f32 %v2709_v3, %v1260_v17  ;;  %v2354_v28 = vmul.f32 %v2720_v11, %v1260_v17  ;;  %v2396_v29 = vmul.f32 %v2731_v7, %v1260_v17  ;;  %v2722_v3 = vld [vmem:[%s3790_s2 + $0x12] ss:$0 sm:$0xff]  ;;  %v2755_v11 = vld [vmem:[%s3790_s2 + $0x15] ss:$0 sm:$0xff]  ;;  %v2766_v7 = vld [vmem:[%s3790_s2 + $0x16] ss:$0 sm:$0xff] }
 0x113   : > { %v2438_v30 = vmul.f32 %v2742_v12, %v1260_v17  ;;  %v2480_v31 = vmul.f32 %v2753_v18, %v1260_v17  ;;  %v2522_v32 = vmul.f32 %v2764_v19, %v1260_v17  ;;  %v2564_v33 = vmul.f32 %v2775_v20, %v1260_v17  ;;  %v2777_v12 = vld [vmem:[%s3790_s2 + $0x17] ss:$0 sm:$0xff]  ;;  %v2713_v25 = vld [vmem:[%s3790_s2 + $0x19] ss:$0 sm:$0xff] }
 0x114   : > { %v2270_v34 = vadd.f32 %v2269_v26, %v2262_v9  ;;  %v2313_v35 = vadd.f32 %v2312_v27, %v2306_v14  ;;  %v2355_v36 = vadd.f32 %v2354_v28, %v2348_v15  ;;  %v2397_v37 = vadd.f32 %v2396_v29, %v2390_v16  ;;  %v2733_v9 = vld [vmem:[%s3790_s2 + $0x13] ss:$0 sm:$0xff]  ;;  %v2724_v28 = vld [vmem:[%s3790_s2 + $0x1a] ss:$0 sm:$0xff]  ;;  %v2735_v29 = vld [vmem:[%s3790_s2 + $0x1b] ss:$0 sm:$0xff] }
 0x115   : > { %v3715_v38 = vadd.f32 %v2438_v30, %v2432_v21  ;;  %v3717_v39 = vadd.f32 %v2480_v31, %v2474_v22  ;;  %v3719_v40 = vadd.f32 %v2522_v32, %v2516_v23  ;;  %v3721_v41 = vadd.f32 %v2564_v33, %v2558_v24  ;;  %v2703_v24 = vld [vmem:[%s3790_s2 + $0x18] ss:$0 sm:$0xff]  ;;  %v2746_v30 = vld [vmem:[%s3790_s2 + $0x1c] ss:$0 sm:$0xff] }
 0x117   : > { %v1343_v42 = vpop.f32.mrf.mxu0 }
 0x119   : > { %v1434_v43 = vpop.f32.mrf.mxu1  ;;  %v3047_v44 = vpop.f32.mrf.mxu0 }
 0x11a   : > { %v1435_v55 = vadd.f32 %v1434_v43, %v1343_v42  ;;  %v2768_v44 = vld [vmem:[%s3790_s2 + $0x1e] ss:$0 sm:$0xff] }
 0x11b   : > { %v3058_v45 = vpop.f32.mrf.mxu1 }
 0x11c   : > { %v2779_v45 = vld [vmem:[%s3790_s2 + $0x1f] ss:$0 sm:$0xff] }
 0x121   : > { %v1514_v46 = vpop.f32.mrf.mxu0 }
 0x122   : > { %v1515_v58 = vadd.f32 %v1514_v46, %v1435_v55 }
 0x123   : > { %v1591_v47 = vpop.f32.mrf.mxu1  ;;  %v3069_v48 = vpop.f32.mrf.mxu0 }
 0x124   : > { %v1592_v60 = vadd.f32 %v1591_v47, %v1515_v58 }
 0x125   : > { %v3080_v49 = vpop.f32.mrf.mxu1 }
 0x12b   : > { %v1674_v50 = vpop.f32.mrf.mxu0 }
 0x12c   : > { %v1675_v61 = vadd.f32 %v1674_v50, %v1592_v60 }
 0x12d   : > { %v1749_v51 = vpop.f32.mrf.mxu1  ;;  %v3091_v52 = vpop.f32.mrf.mxu0 }
 0x12e   : > { %v1750_v2 = vadd.f32 %v1749_v51, %v1675_v61 }
 0x12f   : > { %v3102_v53 = vpop.f32.mrf.mxu1 }
 0x130   : > { %v2277_v13 = vmul.f32 %v2701_v5, %v1750_v2  ;;  %v2319_v14 = vmul.f32 %v2711_v6, %v1750_v2  ;;  %v2361_v15 = vmul.f32 %v2722_v3, %v1750_v2  ;;  %v2403_v16 = vmul.f32 %v2733_v9, %v1750_v2 }
 0x131   : > { %v2445_v18 = vmul.f32 %v2744_v10, %v1750_v2  ;;  %v2487_v19 = vmul.f32 %v2755_v11, %v1750_v2  ;;  %v2529_v20 = vmul.f32 %v2766_v7, %v1750_v2  ;;  %v2571_v21 = vmul.f32 %v2777_v12, %v1750_v2 }
 0x132   : > { %v2278_v26 = vadd.f32 %v2277_v13, %v2270_v34  ;;  %v2320_v32 = vadd.f32 %v2319_v14, %v2313_v35  ;;  %v2362_v33 = vadd.f32 %v2361_v15, %v2355_v36  ;;  %v2404_v42 = vadd.f32 %v2403_v16, %v2397_v37  ;;  %v2757_v34 = vld [vmem:[%s3790_s2 + $0x1d] ss:$0 sm:$0xff] }
 0x133   : > { %v2446_v46 = vadd.f32 %v2445_v18, %v3715_v38  ;;  %v2488_v47 = vadd.f32 %v2487_v19, %v3717_v39  ;;  %v2530_v35 = vadd.f32 %v2529_v20, %v3719_v40  ;;  %v2572_v36 = vadd.f32 %v2571_v21, %v3721_v41 }
 0x135   : > { %v1833_v54 = vpop.f32.mrf.mxu0 }
 0x137   : > { %v1924_v56 = vpop.f32.mrf.mxu1  ;;  %v3113_v57 = vpop.f32.mrf.mxu0 }
 0x138   : > { %v1925_v1 = vadd.f32 %v1924_v56, %v1833_v54 }
 0x139   : > { %v3124_v59 = vpop.f32.mrf.mxu1 }
 0x13f   : > { %v2004_v62 = vpop.f32.mrf.mxu0 }
 0x140   : > { %v2005_v8 = vadd.f32 %v2004_v62, %v1925_v1 }
 0x141   : > { %v2081_v63 = vpop.f32.mrf.mxu1  ;;  %v3135_v0 = vpop.f32.mrf.mxu0 }
 0x142   : > { %v2082_v17 = vadd.f32 %v2081_v63, %v2005_v8 }
 0x143   : > { %v3146_v4 = vpop.f32.mrf.mxu1 }
 0x149   : > { %v2164_v22 = vpop.f32.mrf.mxu0 }
 0x14a   : > { %v2165_v23 = vadd.f32 %v2164_v22, %v2082_v17 }
 0x14b   : > { %v2239_v27 = vpop.f32.mrf.mxu1  ;;  %v3157_v31 = vpop.f32.mrf.mxu0 }
 0x14c   : > { %v2240_v43 = vadd.f32 %v2239_v27, %v2165_v23 }
 0x14d   : > { %v3168_v37 = vpop.f32.mrf.mxu1 }
 0x14e   : > { %v2285_v48 = vmul.f32 %v2703_v24, %v2240_v43  ;;  %v2326_v49 = vmul.f32 %v2713_v25, %v2240_v43  ;;  %v2368_v50 = vmul.f32 %v2724_v28, %v2240_v43  ;;  %v2410_v51 = vmul.f32 %v2735_v29, %v2240_v43 }
 0x14f   : > { %v2452_v52 = vmul.f32 %v2746_v30, %v2240_v43  ;;  %v2494_v53 = vmul.f32 %v2757_v34, %v2240_v43  ;;  %v2536_v54 = vmul.f32 %v2768_v44, %v2240_v43  ;;  %v2578_v55 = vmul.f32 %v2779_v45, %v2240_v43 }
 0x150   : > { %v2286_v38 = vadd.f32 %v2285_v48, %v2278_v26  ;;  %v2327_v56 = vadd.f32 %v2326_v49, %v2320_v32  ;;  %v2369_v39 = vadd.f32 %v2368_v50, %v2362_v33  ;;  %v2411_v57 = vadd.f32 %v2410_v51, %v2404_v42 }
 0x151   : > { %v2453_v40 = vadd.f32 %v2452_v52, %v2446_v46  ;;  %v2495_v58 = vadd.f32 %v2494_v53, %v2488_v47  ;;  %v2537_v41 = vadd.f32 %v2536_v54, %v2530_v35  ;;  %v2579_v59 = vadd.f32 %v2578_v55, %v2572_v36 }
 0x152   : > { %2287 = vst [vmem:[%s272_s29] sm:$0xff] %v2286_v38  ;;  %2714 = vst [vmem:[%s272_s29 + $0x8] sm:$0xff] %v2327_v56 }
 0x153   : > { %2725 = vst [vmem:[%s272_s29 + $0x10] sm:$0xff] %v2369_v39  ;;  %2736 = vst [vmem:[%s272_s29 + $0x18] sm:$0xff] %v2411_v57 }
 0x154   : > { %2747 = vst [vmem:[%s272_s29 + $0x20] sm:$0xff] %v2453_v40  ;;  %2758 = vst [vmem:[%s272_s29 + $0x28] sm:$0xff] %v2495_v58 }
 0x155   : > { %2769 = vst [vmem:[%s272_s29 + $0x30] sm:$0xff] %v2537_v41  ;;  %2780 = vst [vmem:[%s272_s29 + $0x38] sm:$0xff] %v2579_v59 }
 0x156 PF: > { %s15_s20 = sadd.s32 1, %s3219_s20   ;;  %s3794_s18 = smov %s3215_s19 }
 0x157   : > { %p12_p5 = scmp.ge.s32.totalorder %s15_s20, 4   ;;  %s3795_s19 = smov %s3797_s21 }
 0x159   :  { %14 = sbr.rel (!%p12_p5) target bundleno = 2 (0x2), region = 87 }

</bundles_post_ra>
